<compile_context>
chip_gen: v7x
topology: tpu7x:2x2x1
jax: 0.10.0
libtpu: 0.0.40
codegen_flags: <defaults>
</compile_context>

<pallas_src>
import functools

import jax
import jax.numpy as jnp
from jax.scipy.linalg import block_diag
from jax.experimental import pallas as pl
from jax.experimental.pallas import tpu as pltpu


def _round_up(x, m):
    return ((x + m - 1) // m) * m


# ----------------------------- Pallas kernel ------------------------------ #
def _match_predictor_kernel(
    feat_ref,          # (TB, 12)  f32 : [glicko1, glicko2, 10 champion ids]
    sel_ref,           # (10, KOH) f32 : 0/1 selector (id broadcast across NC lanes)
    pat_ref,           # (1, KOH)  f32 : lane pattern (champion id per lane, -1 pad)
    m_ref,             # (KOH, H1P) cdt: embedding folded into fc1 (block-diag)
    wg_ref,            # (2, H1P)  f32 : glicko columns of fc1
    b1_ref,            # (1, H1P)  f32
    w2_ref, b2_ref,    # (H1P, H2P) cdt, (1, H2P) f32   fused fc2
    w3_ref, b3_ref,    # (H2P, H3P) cdt, (1, H3P) f32   fused fc3
    wf_ref, bf_ref,    # (H3P, OUTP) cdt, (1, OUTP) f32 final_fc (zero-padded)
    out_ref,           # (TB, OUTP) f32
):
    cdt = m_ref.dtype                              # compute dtype (bf16 or f32)
    feat = feat_ref[...]
    glicko = feat[:, 0:2]                          # (TB, 2) f32
    idx_f = feat[:, 2:12]                          # (TB, 10) champion ids as f32

    # Broadcast every champion id across its NC-lane span with one small MXU
    # matmul, then one vectorized compare gives the full one-hot (no concat).
    idx_b = jnp.dot(idx_f, sel_ref[...], preferred_element_type=jnp.float32)
    oh = (idx_b == pat_ref[...]).astype(cdt)       # (TB, KOH) one-hot, 10 slots

    # fc1: embedding-gather + fc1 folded into one matmul; glicko path in f32.
    wg = wg_ref[...]
    h = jnp.dot(oh, m_ref[...], preferred_element_type=jnp.float32)
    h = h + glicko[:, 0:1] * wg[0:1, :] + glicko[:, 1:2] * wg[1:2, :] + b1_ref[...]
    h = jnp.maximum(h, 0.0)                        # (TB, H1P) f32

    h = jnp.maximum(jnp.dot(h.astype(cdt), w2_ref[...],
                            preferred_element_type=jnp.float32) + b2_ref[...], 0.0)
    h = jnp.maximum(jnp.dot(h.astype(cdt), w3_ref[...],
                            preferred_element_type=jnp.float32) + b3_ref[...], 0.0)
    out = jnp.dot(h.astype(cdt), wf_ref[...],
                  preferred_element_type=jnp.float32) + bf_ref[...]
    out_ref[...] = out.astype(out_ref.dtype)


# --------------------------- parameter handling ----------------------------- #
def init_params(key, output_dim, num_champions, embedding_dim):
    """Deterministic parameter init mimicking the PyTorch module's shapes."""
    ks = jax.random.split(key, 16)

    def linear(kw, kb, fan_in, fan_out):
        bound = 1.0 / jnp.sqrt(fan_in)
        w = jax.random.uniform(kw, (fan_in, fan_out), jnp.float32, -bound, bound)
        b = jax.random.uniform(kb, (1, fan_out), jnp.float32, -bound, bound)
        return w, b

    e1 = embedding_dim + 1
    params = {}
    params["embedding"] = jax.random.normal(ks[0], (num_champions, embedding_dim),
                                            jnp.float32)
    params["w11"], params["b11"] = linear(ks[1], ks[2], e1, 50)
    params["w12"], params["b12"] = linear(ks[3], ks[4], 50, 25)
    params["w13"], params["b13"] = linear(ks[5], ks[6], 25, 10)
    params["w21"], params["b21"] = linear(ks[7], ks[8], e1, 50)
    params["w22"], params["b22"] = linear(ks[9], ks[10], 50, 25)
    params["w23"], params["b23"] = linear(ks[11], ks[12], 25, 10)
    params["wf"], params["bf"] = linear(ks[13], ks[14], 100, output_dim)
    return params


def _pad2(a, shape):
    out = jnp.zeros(shape, a.dtype)
    return out.at[:a.shape[0], :a.shape[1]].set(a)


def pack_params(params, dtype=jnp.bfloat16):
    """One-time packing: fold embedding into fc1, block-diag fuse both teams'
    MLPs, and zero-pad every dim to lane/MXU-friendly sizes."""
    emb = params["embedding"]                          # (NC, E)
    nc, e = emb.shape
    out_dim = params["wf"].shape[1]
    eye5 = jnp.eye(5, dtype=jnp.float32)

    w11e, w11g = params["w11"][:e], params["w11"][e:e + 1]   # (E,50), (1,50)
    w21e, w21g = params["w21"][:e], params["w21"][e:e + 1]

    # Embedding gather folded into fc1: per-slot block = emb @ w1_emb  (NC, 50).
    m = block_diag(jnp.kron(eye5, emb @ w11e),
                   jnp.kron(eye5, emb @ w21e))             # (10*NC, 500)

    # Glicko path of fc1, kept separate (and f32) for accuracy.
    z250 = jnp.zeros((1, 250), jnp.float32)
    wg = jnp.concatenate([
        jnp.concatenate([jnp.tile(w11g, (1, 5)), z250], axis=1),
        jnp.concatenate([z250, jnp.tile(w21g, (1, 5))], axis=1),
    ], axis=0)                                             # (2, 500)
    b1 = jnp.concatenate([jnp.tile(params["b11"], (1, 5)),
                          jnp.tile(params["b21"], (1, 5))], axis=1)       # (1, 500)

    w2 = block_diag(jnp.kron(eye5, params["w12"]),
                    jnp.kron(eye5, params["w22"]))         # (500, 250)
    b2 = jnp.concatenate([jnp.tile(params["b12"], (1, 5)),
                          jnp.tile(params["b22"], (1, 5))], axis=1)
    w3 = block_diag(jnp.kron(eye5, params["w13"]),
                    jnp.kron(eye5, params["w23"]))         # (250, 100)
    b3 = jnp.concatenate([jnp.tile(params["b13"], (1, 5)),
                          jnp.tile(params["b23"], (1, 5))], axis=1)

    # Lane/MXU-friendly padded sizes (all padding is zero -> math unchanged).
    koh = _round_up(10 * nc, 128)
    h1p = _round_up(500, 128)          # 512
    h2p = _round_up(250, 128)          # 256
    h3p = _round_up(100, 128)          # 128
    outp = _round_up(out_dim, 128)     # lane-dense output

    # Selector (broadcasts the 10 champion-id columns across NC lanes each) and
    # the matching lane pattern; padded lanes get -1 so they never match.
    k_iota = jnp.arange(koh)
    sel = (k_iota[None, :] // nc == jnp.arange(10)[:, None]).astype(jnp.float32)
    pattern = jnp.where(k_iota < 10 * nc,
                        (k_iota % nc).astype(jnp.float32), -1.0)[None, :]

    return {
        "sel": sel,                                              # (10, KOH) f32
        "pattern": pattern,                                      # (1, KOH)  f32
        "m": _pad2(m, (koh, h1p)).astype(dtype),
        "wg": _pad2(wg, (2, h1p)),                               # f32
        "b1": _pad2(b1, (1, h1p)),
        "w2": _pad2(w2, (h1p, h2p)).astype(dtype),
        "b2": _pad2(b2, (1, h2p)),
        "w3": _pad2(w3, (h2p, h3p)).astype(dtype),
        "b3": _pad2(b3, (1, h3p)),
        "wf": _pad2(params["wf"], (h3p, outp)).astype(dtype),
        "bf": _pad2(params["bf"], (1, outp)),
    }


# ------------------------------ JAX wrapper -------------------------------- #
@functools.partial(jax.jit, static_argnames=("out_dim", "block_rows"))
def match_predictor_forward(features, packed, out_dim, block_rows=1024):
    """features: (B, 12) float32.  Returns (B, out_dim) float32."""
    b = features.shape[0]
    outp = packed["bf"].shape[1]

    # Batch tile: multiple of 8; large (amortizes per-grid-step overhead) but
    # capped at ceil(B/2) so there are >=2 grid steps when the batch allows
    # (both v7x TensorCores get work on the "parallel" axis).
    tb = min(block_rows, max(8, _round_up(-(-b // 2), 8)))
    b_pad = _round_up(b, tb)
    feat = features.astype(jnp.float32)
    if b_pad != b:
        feat = jnp.concatenate(
            [feat, jnp.zeros((b_pad - b, feat.shape[1]), jnp.float32)], axis=0)

    weight_args = (packed["sel"], packed["pattern"], packed["m"], packed["wg"],
                   packed["b1"], packed["w2"], packed["b2"], packed["w3"],
                   packed["b3"], packed["wf"], packed["bf"])

    def full_spec(a):  # whole-array block, constant index map -> VMEM-resident
        return pl.BlockSpec(a.shape, lambda i: (0, 0))

    out = pl.pallas_call(
        _match_predictor_kernel,
        grid=(b_pad // tb,),
        in_specs=[pl.BlockSpec((tb, feat.shape[1]), lambda i: (i, 0))]
                 + [full_spec(a) for a in weight_args],
        out_specs=pl.BlockSpec((tb, outp), lambda i: (i, 0)),
        out_shape=jax.ShapeDtypeStruct((b_pad, outp), jnp.float32),
        compiler_params=pltpu.CompilerParams(
            dimension_semantics=("parallel",),
            vmem_limit_bytes=32 * 1024 * 1024,
        ),
    )(feat, *weight_args)
    return out[:b, :out_dim]


# --------------------------- pure-JAX reference ---------------------------- #
def match_predictor_reference(features, params):
    glicko1 = features[:, 0:1]
    glicko2 = features[:, 1:2]
    champ_idx = features[:, 2:12].astype(jnp.int32)
    t1_idx, t2_idx = champ_idx[:, :5], champ_idx[:, 5:]
    emb_table = params["embedding"]

    def mlp(x, w1, b1, w2, b2, w3, b3):
        h = jnp.maximum(x @ w1 + b1, 0.0)
        h = jnp.maximum(h @ w2 + b2, 0.0)
        return jnp.maximum(h @ w3 + b3, 0.0)

    outs1 = []
    for i in range(5):
        e = jnp.take(emb_table, t1_idx[:, i], axis=0)
        x = jnp.concatenate([e, glicko1], axis=1)
        outs1.append(mlp(x, params["w11"], params["b11"], params["w12"],
                         params["b12"], params["w13"], params["b13"]))
    outs2 = []
    for i in range(5):
        e = jnp.take(emb_table, t2_idx[:, i], axis=0)
        x = jnp.concatenate([e, glicko2], axis=1)
        outs2.append(mlp(x, params["w21"], params["b21"], params["w22"],
                         params["b22"], params["w23"], params["b23"]))
    cat = jnp.concatenate(outs1 + outs2, axis=1)     # (B, 100)
    return cat @ params["wf"] + params["bf"]


# ----------------------------------- main ----------------------------------- #
if __name__ == "__main__":
    B = 8
    NUM_CHAMPIONS = 32
    EMBEDDING_DIM = 16
    OUTPUT_DIM = 1

    key = jax.random.PRNGKey(0)
    k_params, k_glicko, k_ids = jax.random.split(key, 3)

    params = init_params(k_params, OUTPUT_DIM, NUM_CHAMPIONS, EMBEDDING_DIM)

    glicko = jax.random.uniform(k_glicko, (B, 2), jnp.float32, 1000.0, 2000.0)
    champ_ids = jax.random.randint(k_ids, (B, 10), 0, NUM_CHAMPIONS).astype(jnp.float32)
    # NOTE: out-of-range ids give a zero embedding here (one-hot gather),
    # whereas torch/jnp.take would clamp; ids here are always in range.
    features = jnp.concatenate([glicko, champ_ids], axis=1)   # (B, 12) float32

    ref = match_predictor_reference(features, params)

    # f32 packing: tight check of the fused/folded math vs the reference.
    packed_f32 = pack_params(params, dtype=jnp.float32)
    out_f32 = jax.block_until_ready(
        match_predictor_forward(features, packed_f32, OUTPUT_DIM))
    assert out_f32.shape == (B, OUTPUT_DIM)
    assert jnp.allclose(out_f32, ref, rtol=1e-3, atol=1e-2), (
        f"f32 mismatch: max abs diff {jnp.max(jnp.abs(out_f32 - ref)):.3e}")

    # bf16 packing (recommended on-TPU path): MXU-native weights, f32 accumulation.
    packed_bf16 = pack_params(params, dtype=jnp.bfloat16)
    out_bf16 = jax.block_until_ready(
        match_predictor_forward(features, packed_bf16, OUTPUT_DIM))
    assert out_bf16.shape == (B, OUTPUT_DIM)
    scale = jnp.maximum(jnp.max(jnp.abs(ref)), 1.0)
    rel_err = jnp.max(jnp.abs(out_bf16 - ref)) / scale
    assert rel_err < 1e-1, f"bf16 mismatch: relative error {rel_err:.3e}"

    print("KERNEL_OK")
</pallas_src>

<mosaic_0001>
module attributes {stable_mosaic.version = 11 : i64} {
  func.func @_match_predictor_kernel(%arg0: i32, %arg1: memref<8x12xf32, #tpu.memory_space<vmem>>, %arg2: memref<10x384xf32, #tpu.memory_space<vmem>>, %arg3: memref<1x384xf32, #tpu.memory_space<vmem>>, %arg4: memref<384x512xf32, #tpu.memory_space<vmem>>, %arg5: memref<2x512xf32, #tpu.memory_space<vmem>>, %arg6: memref<1x512xf32, #tpu.memory_space<vmem>>, %arg7: memref<512x256xf32, #tpu.memory_space<vmem>>, %arg8: memref<1x256xf32, #tpu.memory_space<vmem>>, %arg9: memref<256x128xf32, #tpu.memory_space<vmem>>, %arg10: memref<1x128xf32, #tpu.memory_space<vmem>>, %arg11: memref<128x128xf32, #tpu.memory_space<vmem>>, %arg12: memref<1x128xf32, #tpu.memory_space<vmem>>, %arg13: memref<8x128xf32, #tpu.memory_space<vmem>>) attributes {dimension_semantics = [#tpu.dimension_semantics<parallel>], iteration_bounds = array<i64: 1>, scalar_prefetch = 0 : i64, scratch_operands = 0 : i64, tpu.core_type = #tpu.core_type<tc>, window_params = [{transform_indices = @transform_0, window_bounds = array<i64: 8, 12>}, {pipeline_mode = #tpu.pipeline_mode<synchronous>, transform_indices = @transform_1, window_bounds = array<i64: 10, 384>}, {pipeline_mode = #tpu.pipeline_mode<synchronous>, transform_indices = @transform_2, window_bounds = array<i64: 1, 384>}, {pipeline_mode = #tpu.pipeline_mode<synchronous>, transform_indices = @transform_3, window_bounds = array<i64: 384, 512>}, {pipeline_mode = #tpu.pipeline_mode<synchronous>, transform_indices = @transform_4, window_bounds = array<i64: 2, 512>}, {pipeline_mode = #tpu.pipeline_mode<synchronous>, transform_indices = @transform_5, window_bounds = array<i64: 1, 512>}, {pipeline_mode = #tpu.pipeline_mode<synchronous>, transform_indices = @transform_6, window_bounds = array<i64: 512, 256>}, {pipeline_mode = #tpu.pipeline_mode<synchronous>, transform_indices = @transform_7, window_bounds = array<i64: 1, 256>}, {pipeline_mode = #tpu.pipeline_mode<synchronous>, transform_indices = @transform_8, window_bounds = array<i64: 256, 128>}, {pipeline_mode = #tpu.pipeline_mode<synchronous>, transform_indices = @transform_9, window_bounds = array<i64: 1, 128>}, {pipeline_mode = #tpu.pipeline_mode<synchronous>, transform_indices = @transform_10, window_bounds = array<i64: 128, 128>}, {pipeline_mode = #tpu.pipeline_mode<synchronous>, transform_indices = @transform_11, window_bounds = array<i64: 1, 128>}, {transform_indices = @transform_12, window_bounds = array<i64: 8, 128>}]} {
    %c0 = arith.constant 0 : index
    %c0_0 = arith.constant 0 : index
    %0 = vector.load %arg1[%c0, %c0_0] : memref<8x12xf32, #tpu.memory_space<vmem>>, vector<8x12xf32>
    %1 = vector.extract_strided_slice %0 {offsets = [0, 0], sizes = [8, 2], strides = [1, 1]} : vector<8x12xf32> to vector<8x2xf32>
    %2 = vector.extract_strided_slice %0 {offsets = [0, 2], sizes = [8, 10], strides = [1, 1]} : vector<8x12xf32> to vector<8x10xf32>
    %c0_1 = arith.constant 0 : index
    %c0_2 = arith.constant 0 : index
    %3 = vector.load %arg2[%c0_1, %c0_2] : memref<10x384xf32, #tpu.memory_space<vmem>>, vector<10x384xf32>
    %cst = arith.constant dense<0.000000e+00> : vector<8x384xf32>
    %4 = tpu.matmul %2, %3, %cst {dimension_numbers = #tpu.dot_dimension_numbers<[1], [0], [0], [1], [0, 0, 1, 1], [], []>} : vector<8x10xf32>, vector<10x384xf32>, vector<8x384xf32> -> vector<8x384xf32>
    %c0_3 = arith.constant 0 : index
    %c0_4 = arith.constant 0 : index
    %5 = vector.load %arg3[%c0_3, %c0_4] : memref<1x384xf32, #tpu.memory_space<vmem>>, vector<1x384xf32>
    %6 = vector.broadcast %5 : vector<1x384xf32> to vector<8x384xf32>
    %7 = arith.cmpf oeq, %4, %6 : vector<8x384xf32>
    %8 = arith.extui %7 : vector<8x384xi1> to vector<8x384xi32>
    %9 = arith.sitofp %8 : vector<8x384xi32> to vector<8x384xf32>
    %c0_5 = arith.constant 0 : index
    %c0_6 = arith.constant 0 : index
    %10 = vector.load %arg5[%c0_5, %c0_6] : memref<2x512xf32, #tpu.memory_space<vmem>>, vector<2x512xf32>
    %c0_7 = arith.constant 0 : index
    %c0_8 = arith.constant 0 : index
    %11 = vector.load %arg4[%c0_7, %c0_8] : memref<384x512xf32, #tpu.memory_space<vmem>>, vector<384x512xf32>
    %cst_9 = arith.constant dense<0.000000e+00> : vector<8x512xf32>
    %12 = tpu.matmul %9, %11, %cst_9 {dimension_numbers = #tpu.dot_dimension_numbers<[1], [0], [0], [1], [0, 0, 1, 1], [], []>} : vector<8x384xf32>, vector<384x512xf32>, vector<8x512xf32> -> vector<8x512xf32>
    %13 = vector.extract_strided_slice %1 {offsets = [0, 0], sizes = [8, 1], strides = [1, 1]} : vector<8x2xf32> to vector<8x1xf32>
    %14 = vector.extract_strided_slice %10 {offsets = [0, 0], sizes = [1, 512], strides = [1, 1]} : vector<2x512xf32> to vector<1x512xf32>
    %15 = vector.broadcast %13 : vector<8x1xf32> to vector<8x512xf32>
    %16 = vector.broadcast %14 : vector<1x512xf32> to vector<8x512xf32>
    %17 = arith.mulf %15, %16 : vector<8x512xf32>
    %18 = arith.addf %12, %17 : vector<8x512xf32>
    %19 = vector.extract_strided_slice %1 {offsets = [0, 1], sizes = [8, 1], strides = [1, 1]} : vector<8x2xf32> to vector<8x1xf32>
    %20 = vector.extract_strided_slice %10 {offsets = [1, 0], sizes = [1, 512], strides = [1, 1]} : vector<2x512xf32> to vector<1x512xf32>
    %21 = vector.broadcast %19 : vector<8x1xf32> to vector<8x512xf32>
    %22 = vector.broadcast %20 : vector<1x512xf32> to vector<8x512xf32>
    %23 = arith.mulf %21, %22 : vector<8x512xf32>
    %24 = arith.addf %18, %23 : vector<8x512xf32>
    %c0_10 = arith.constant 0 : index
    %c0_11 = arith.constant 0 : index
    %25 = vector.load %arg6[%c0_10, %c0_11] : memref<1x512xf32, #tpu.memory_space<vmem>>, vector<1x512xf32>
    %26 = vector.broadcast %25 : vector<1x512xf32> to vector<8x512xf32>
    %27 = arith.addf %24, %26 : vector<8x512xf32>
    %cst_12 = arith.constant 0.000000e+00 : f32
    %28 = vector.broadcast %cst_12 : f32 to vector<8x512xf32>
    %29 = arith.maximumf %27, %28 : vector<8x512xf32>
    %c0_13 = arith.constant 0 : index
    %c0_14 = arith.constant 0 : index
    %30 = vector.load %arg7[%c0_13, %c0_14] : memref<512x256xf32, #tpu.memory_space<vmem>>, vector<512x256xf32>
    %cst_15 = arith.constant dense<0.000000e+00> : vector<8x256xf32>
    %31 = tpu.matmul %29, %30, %cst_15 {dimension_numbers = #tpu.dot_dimension_numbers<[1], [0], [0], [1], [0, 0, 1, 1], [], []>} : vector<8x512xf32>, vector<512x256xf32>, vector<8x256xf32> -> vector<8x256xf32>
    %c0_16 = arith.constant 0 : index
    %c0_17 = arith.constant 0 : index
    %32 = vector.load %arg8[%c0_16, %c0_17] : memref<1x256xf32, #tpu.memory_space<vmem>>, vector<1x256xf32>
    %33 = vector.broadcast %32 : vector<1x256xf32> to vector<8x256xf32>
    %34 = arith.addf %31, %33 : vector<8x256xf32>
    %cst_18 = arith.constant 0.000000e+00 : f32
    %35 = vector.broadcast %cst_18 : f32 to vector<8x256xf32>
    %36 = arith.maximumf %34, %35 : vector<8x256xf32>
    %c0_19 = arith.constant 0 : index
    %c0_20 = arith.constant 0 : index
    %37 = vector.load %arg9[%c0_19, %c0_20] : memref<256x128xf32, #tpu.memory_space<vmem>>, vector<256x128xf32>
    %cst_21 = arith.constant dense<0.000000e+00> : vector<8x128xf32>
    %38 = tpu.matmul %36, %37, %cst_21 {dimension_numbers = #tpu.dot_dimension_numbers<[1], [0], [0], [1], [0, 0, 1, 1], [], []>} : vector<8x256xf32>, vector<256x128xf32>, vector<8x128xf32> -> vector<8x128xf32>
    %c0_22 = arith.constant 0 : index
    %c0_23 = arith.constant 0 : index
    %39 = vector.load %arg10[%c0_22, %c0_23] : memref<1x128xf32, #tpu.memory_space<vmem>>, vector<1x128xf32>
    %40 = vector.broadcast %39 : vector<1x128xf32> to vector<8x128xf32>
    %41 = arith.addf %38, %40 : vector<8x128xf32>
    %cst_24 = arith.constant 0.000000e+00 : f32
    %42 = vector.broadcast %cst_24 : f32 to vector<8x128xf32>
    %43 = arith.maximumf %41, %42 : vector<8x128xf32>
    %c0_25 = arith.constant 0 : index
    %c0_26 = arith.constant 0 : index
    %44 = vector.load %arg11[%c0_25, %c0_26] : memref<128x128xf32, #tpu.memory_space<vmem>>, vector<128x128xf32>
    %cst_27 = arith.constant dense<0.000000e+00> : vector<8x128xf32>
    %45 = tpu.matmul %43, %44, %cst_27 {dimension_numbers = #tpu.dot_dimension_numbers<[1], [0], [0], [1], [0, 0, 1, 1], [], []>} : vector<8x128xf32>, vector<128x128xf32>, vector<8x128xf32> -> vector<8x128xf32>
    %c0_28 = arith.constant 0 : index
    %c0_29 = arith.constant 0 : index
    %46 = vector.load %arg12[%c0_28, %c0_29] : memref<1x128xf32, #tpu.memory_space<vmem>>, vector<1x128xf32>
    %47 = vector.broadcast %46 : vector<1x128xf32> to vector<8x128xf32>
    %48 = arith.addf %45, %47 : vector<8x128xf32>
    %c0_30 = arith.constant 0 : index
    %c0_31 = arith.constant 0 : index
    %49 = vector.load %arg13[%c0_30, %c0_31] : memref<8x128xf32, #tpu.memory_space<vmem>>, vector<8x128xf32>
    tpu.vector_store %arg13[%c0_30, %c0_31], %48 {strides = array<i32>} : memref<8x128xf32, #tpu.memory_space<vmem>>, vector<8x128xf32>,
    return
  }
  func.func @transform_0(%arg0: i32) -> (i32, i32) {
    %c0_i32 = arith.constant 0 : i32
    %c0_i32_0 = arith.constant 0 : i32
    return %arg0, %c0_i32 : i32, i32
  }
  func.func @transform_1(%arg0: i32) -> (i32, i32) {
    %c0_i32 = arith.constant 0 : i32
    %c0_i32_0 = arith.constant 0 : i32
    %c0_i32_1 = arith.constant 0 : i32
    return %c0_i32, %c0_i32_0 : i32, i32
  }
  func.func @transform_2(%arg0: i32) -> (i32, i32) {
    %c0_i32 = arith.constant 0 : i32
    %c0_i32_0 = arith.constant 0 : i32
    %c0_i32_1 = arith.constant 0 : i32
    return %c0_i32, %c0_i32_0 : i32, i32
  }
  func.func @transform_3(%arg0: i32) -> (i32, i32) {
    %c0_i32 = arith.constant 0 : i32
    %c0_i32_0 = arith.constant 0 : i32
    %c0_i32_1 = arith.constant 0 : i32
    return %c0_i32, %c0_i32_0 : i32, i32
  }
  func.func @transform_4(%arg0: i32) -> (i32, i32) {
    %c0_i32 = arith.constant 0 : i32
    %c0_i32_0 = arith.constant 0 : i32
    %c0_i32_1 = arith.constant 0 : i32
    return %c0_i32, %c0_i32_0 : i32, i32
  }
  func.func @transform_5(%arg0: i32) -> (i32, i32) {
    %c0_i32 = arith.constant 0 : i32
    %c0_i32_0 = arith.constant 0 : i32
    %c0_i32_1 = arith.constant 0 : i32
    return %c0_i32, %c0_i32_0 : i32, i32
  }
  func.func @transform_6(%arg0: i32) -> (i32, i32) {
    %c0_i32 = arith.constant 0 : i32
    %c0_i32_0 = arith.constant 0 : i32
    %c0_i32_1 = arith.constant 0 : i32
    return %c0_i32, %c0_i32_0 : i32, i32
  }
  func.func @transform_7(%arg0: i32) -> (i32, i32) {
    %c0_i32 = arith.constant 0 : i32
    %c0_i32_0 = arith.constant 0 : i32
    %c0_i32_1 = arith.constant 0 : i32
    return %c0_i32, %c0_i32_0 : i32, i32
  }
  func.func @transform_8(%arg0: i32) -> (i32, i32) {
    %c0_i32 = arith.constant 0 : i32
    %c0_i32_0 = arith.constant 0 : i32
    %c0_i32_1 = arith.constant 0 : i32
    return %c0_i32, %c0_i32_0 : i32, i32
  }
  func.func @transform_9(%arg0: i32) -> (i32, i32) {
    %c0_i32 = arith.constant 0 : i32
    %c0_i32_0 = arith.constant 0 : i32
    %c0_i32_1 = arith.constant 0 : i32
    return %c0_i32, %c0_i32_0 : i32, i32
  }
  func.func @transform_10(%arg0: i32) -> (i32, i32) {
    %c0_i32 = arith.constant 0 : i32
    %c0_i32_0 = arith.constant 0 : i32
    %c0_i32_1 = arith.constant 0 : i32
    return %c0_i32, %c0_i32_0 : i32, i32
  }
  func.func @transform_11(%arg0: i32) -> (i32, i32) {
    %c0_i32 = arith.constant 0 : i32
    %c0_i32_0 = arith.constant 0 : i32
    %c0_i32_1 = arith.constant 0 : i32
    return %c0_i32, %c0_i32_0 : i32, i32
  }
  func.func @transform_12(%arg0: i32) -> (i32, i32) {
    %c0_i32 = arith.constant 0 : i32
    %c0_i32_0 = arith.constant 0 : i32
    return %arg0, %c0_i32 : i32, i32
  }
}

</mosaic_0001>

<bundles_post_ra>
// kernel: match_predictor_forward.1
= control target key start
LH: loop header
LB: loop body
LE: loop exit
PB: predicated region body
PF: predicated region fallthrough
CT: control target
= control target key end

     0   :  { %17 = vsyncpa [#allocation3], 0  ;;  %s2439_s0 = inlined_call_operand.hbm [shape: f32[8,12], index: 0, kind: input, shape index: {}]   ;;  %s2440_s1 = inlined_call_operand.hbm [shape: f32[10,384], index: 1, kind: input, shape index: {}]   ;;  %s2441_s2 = inlined_call_operand.vmem [shape: f32[1,384], index: 2, kind: input, shape index: {}]   ;;  %s2442_s3 = inlined_call_operand.hbm [shape: f32[384,512], index: 3, kind: input, shape index: {}]   ;;  %s2443_s4 = inlined_call_operand.vmem [shape: f32[2,512], index: 4, kind: input, shape index: {}]   ;;  %s2444_s5 = inlined_call_operand.hbm [shape: f32[1,512], index: 5, kind: input, shape index: {}]   ;;  %s2445_s6 = inlined_call_operand.hbm [shape: f32[512,256], index: 6, kind: input, shape index: {}]   ;;  %s2446_s7 = inlined_call_operand.vmem [shape: f32[1,256], index: 7, kind: input, shape index: {}]   ;;  %s2447_s8 = inlined_call_operand.hbm [shape: f32[256,128], index: 8, kind: input, shape index: {}]   ;;  %s2448_s9 = inlined_call_operand.vmem [shape: f32[1,128], index: 9, kind: input, shape index: {}]   ;;  %s2449_s10 = inlined_call_operand.hbm [shape: f32[128,128], index: 10, kind: input, shape index: {}]   ;;  %s2450_s11 = inlined_call_operand.vmem [shape: f32[1,128], index: 11, kind: input, shape index: {}]   ;;  %s2451_s12 = inlined_call_operand.vmem [shape: f32[8,128], index: 12, kind: output, shape index: {}]  }
   0x1   :  { %18 = vsyncpa [#allocation5], 0 }
   0x2   :  { %19 = vsyncpa [#allocation8], 0 }
   0x3   :  { %20 = vsyncpa [#allocation11], 0  ;;  %s2117_s21 = smov [#allocation4]   ;;  %s1955_s25 = scalar_lea.hbm %s2440_s1, 768 }
   0x4   :  { %s36_s22 = sshll.u32 %s2117_s21, 4  ;;  %p1956_p0 = scmp.ne.s32.totalorder %s2440_s1, %s1955_s25  ;;  %s37_s22 = int_to_ptr.vmem [resolvable:$true] %s36_s22 }
   0x5   :  { %p1959_p1 = scmp.lt.u32.totalorder %s1955_s25, %s2440_s1 }
   0x7   :  { %p1961_p2 = pnand %p1959_p1, %p1956_p0 }
   0x9   :  { %1964 = shalt.err (!%p1961_p2)
}
   0xa   :  { %s1965_s30 = scalar_lea.vmem %s37_s22, 768  ;;  %p1970_p4 = scmp.lt.s32.totalorder %s37_s22, %s37_s22 }
   0xb   :  { %p1966_p3 = scmp.ne.s32.totalorder %s37_s22, %s1965_s30  ;;  %p1971_p5 = scmp.lt.s32.totalorder %s1965_s30, %s1965_s30 }
   0xd   :  { %p1972_p6 = por %p1971_p5, %p1970_p4 }
   0xf   :  { %p1973_p7 = pnand %p1972_p6, %p1966_p3 }
  0x11   :  { %1976 = shalt.err (!%p1973_p7)
}
  0x12   :  { %s2118_s13 = smov 384   ;;  %s2119_s14 = smov 24  }
  0x13   :  { %42 = dma.hbm_to_vmem [thread:$0]  %s2440_s1, 768, %s37_s22, [#allocation5], %s2118_s13, %s2118_s13, %s2119_s14  }
  0x14   :  { %s2120_s17 = smov [#allocation7]   ;;  %s2121_s19 = smov [#allocation10]  }
  0x15   :  { %s65_s18 = sshll.u32 %s2120_s17, 4  ;;  %s88_s20 = sshll.u32 %s2121_s19, 4  ;;  %s66_s18 = int_to_ptr.vmem [resolvable:$true] %s65_s18  ;;  %s89_s20 = int_to_ptr.vmem [resolvable:$true] %s88_s20 }
  0x16   :  { %s1977_s24 = scalar_lea.hbm %s2444_s5, 64 }
  0x17   :  { %p1978_p8 = scmp.ne.s32.totalorder %s2444_s5, %s1977_s24  ;;  %p1981_p9 = scmp.lt.u32.totalorder %s1977_s24, %s2444_s5 }
  0x19   :  { %p1983_p10 = pnand %p1981_p9, %p1978_p8 }
  0x1b   :  { %1986 = shalt.err (!%p1983_p10)
}
  0x1c   :  { %s1987_s1 = scalar_lea.vmem %s66_s18, 64  ;;  %p1992_p12 = scmp.lt.s32.totalorder %s66_s18, %s66_s18 }
  0x1d   :  { %p1988_p11 = scmp.ne.s32.totalorder %s66_s18, %s1987_s1  ;;  %p1993_p13 = scmp.lt.s32.totalorder %s1987_s1, %s1987_s1 }
  0x1f   :  { %p1994_p0 = por %p1993_p13, %p1992_p12 }
  0x21   :  { %p1995_p1 = pnand %p1994_p0, %p1988_p11 }
  0x23   :  { %1998 = shalt.err (!%p1995_p1)
}
  0x24   :  { %68 = dma.hbm_to_vmem [thread:$0]  %s2444_s5, 64, %s66_s18, [#allocation8]  }
  0x25   :  { %s1999_s14 = scalar_lea.hbm %s2447_s8, 4096 }
  0x26   :  { %p2000_p2 = scmp.ne.s32.totalorder %s2447_s8, %s1999_s14  ;;  %p2003_p3 = scmp.lt.u32.totalorder %s1999_s14, %s2447_s8 }
  0x28   :  { %p2005_p4 = pnand %p2003_p3, %p2000_p2 }
  0x2a   :  { %2008 = shalt.err (!%p2005_p4)
}
  0x2b   :  { %s2009_s21 = scalar_lea.vmem %s89_s20, 4096  ;;  %p2014_p6 = scmp.lt.s32.totalorder %s89_s20, %s89_s20 }
  0x2c   :  { %p2010_p5 = scmp.ne.s32.totalorder %s89_s20, %s2009_s21  ;;  %p2015_p7 = scmp.lt.s32.totalorder %s2009_s21, %s2009_s21 }
  0x2e   :  { %p2016_p8 = por %p2015_p7, %p2014_p6 }
  0x30   :  { %p2017_p9 = pnand %p2016_p8, %p2010_p5 }
  0x32   :  { %2020 = shalt.err (!%p2017_p9)
}
  0x33   :  { %s2122_s5 = smov 128   ;;  %s2123_s18 = smov 8  }
  0x34   :  { %94 = dma.hbm_to_vmem [thread:$0]  %s2447_s8, 4096, %s89_s20, [#allocation11], %s2122_s5, %s2122_s5, %s2123_s18  }
  0x35   :  { %s2124_s25 = smov [#allocation2]   ;;  %s2125_s27 = smov [#allocation6]  }
  0x36   :  { %s27_s26 = sshll.u32 %s2124_s25, 4  ;;  %s50_s28 = sshll.u32 %s2125_s27, 4  ;;  %s28_s26 = int_to_ptr.vmem [resolvable:$true] %s27_s26  ;;  %s51_s28 = int_to_ptr.vmem [resolvable:$true] %s50_s28 }
  0x37   :  { %s2021_s29 = scalar_lea.hbm %s2439_s0, 128 }
  0x38   :  { %p2022_p10 = scmp.ne.s32.totalorder %s2439_s0, %s2021_s29  ;;  %p2025_p11 = scmp.lt.u32.totalorder %s2021_s29, %s2439_s0 }
  0x3a   :  { %p2027_p12 = pnand %p2025_p11, %p2022_p10 }
  0x3c   :  { %2030 = shalt.err (!%p2027_p12)
}
  0x3d   :  { %s2031_s8 = scalar_lea.vmem %s28_s26, 128  ;;  %p2036_p0 = scmp.lt.s32.totalorder %s28_s26, %s28_s26 }
  0x3e   :  { %p2032_p13 = scmp.ne.s32.totalorder %s28_s26, %s2031_s8  ;;  %p2037_p1 = scmp.lt.s32.totalorder %s2031_s8, %s2031_s8 }
  0x40   :  { %p2038_p2 = por %p2037_p1, %p2036_p0 }
  0x42   :  { %p2039_p3 = pnand %p2038_p2, %p2032_p13 }
  0x44   :  { %2042 = shalt.err (!%p2039_p3)
}
  0x45   :  { %30 = dma.hbm_to_vmem [thread:$0]  %s2439_s0, 128, %s28_s26, [#allocation3]  }
  0x46   :  { %s2043_s21 = scalar_lea.hbm %s2442_s3, 24576 }
  0x47   :  { %p2044_p4 = scmp.ne.s32.totalorder %s2442_s3, %s2043_s21  ;;  %p2047_p5 = scmp.lt.u32.totalorder %s2043_s21, %s2442_s3 }
  0x49   :  { %p2049_p6 = pnand %p2047_p5, %p2044_p4 }
  0x4b   :  { %2052 = shalt.err (!%p2049_p6)
}
  0x4c   :  { %s2053_s1 = scalar_lea.vmem %s51_s28, 24576  ;;  %p2058_p8 = scmp.lt.s32.totalorder %s51_s28, %s51_s28 }
  0x4d   :  { %p2054_p7 = scmp.ne.s32.totalorder %s51_s28, %s2053_s1  ;;  %p2059_p9 = scmp.lt.s32.totalorder %s2053_s1, %s2053_s1 }
  0x4f   :  { %p2060_p10 = por %p2059_p9, %p2058_p8 }
  0x51   :  { %p2061_p11 = pnand %p2060_p10, %p2054_p7 }
  0x53   :  { %2064 = shalt.err (!%p2061_p11)
}
  0x54   :  { %s2126_s0 = smov 512   ;;  %s2127_s26 = smov 32  }
  0x55   :  { %56 = dma.hbm_to_vmem [thread:$0]  %s2442_s3, 24576, %s51_s28, [#allocation5], %s2126_s0, %s2126_s0, %s2127_s26  }
  0x56   :  { %s2128_s30 = smov [#allocation9]   ;;  %s2065_s8 = scalar_lea.hbm %s2445_s6, 16384 }
  0x57   :  { %s74_s13 = sshll.u32 %s2128_s30, 4  ;;  %p2066_p12 = scmp.ne.s32.totalorder %s2445_s6, %s2065_s8  ;;  %s75_s13 = int_to_ptr.vmem [resolvable:$true] %s74_s13 }
  0x58   :  { %p2069_p13 = scmp.lt.u32.totalorder %s2065_s8, %s2445_s6 }
  0x5a   :  { %p2071_p0 = pnand %p2069_p13, %p2066_p12 }
  0x5c   :  { %2074 = shalt.err (!%p2071_p0)
}
  0x5d   :  { %s2075_s21 = scalar_lea.vmem %s75_s13, 16384  ;;  %p2080_p2 = scmp.lt.s32.totalorder %s75_s13, %s75_s13 }
  0x5e   :  { %p2076_p1 = scmp.ne.s32.totalorder %s75_s13, %s2075_s21  ;;  %p2081_p3 = scmp.lt.s32.totalorder %s2075_s21, %s2075_s21 }
  0x60   :  { %p2082_p4 = por %p2081_p3, %p2080_p2 }
  0x62   :  { %p2083_p5 = pnand %p2082_p4, %p2076_p1 }
  0x64   :  { %2086 = shalt.err (!%p2083_p5)
}
  0x65   :  { %s2129_s3 = smov 256   ;;  %s2130_s28 = smov 16  }
  0x66   :  { %80 = dma.hbm_to_vmem [thread:$0]  %s2445_s6, 16384, %s75_s13, [#allocation8], %s2129_s3, %s2129_s3, %s2130_s28  }
  0x67   :  { %s2131_s25 = smov [#allocation12]   ;;  %s2087_s26 = scalar_lea.hbm %s2449_s10, 2048 }
  0x68   :  { %s102_s27 = sshll.u32 %s2131_s25, 4  ;;  %p2088_p6 = scmp.ne.s32.totalorder %s2449_s10, %s2087_s26  ;;  %s103_s27 = int_to_ptr.vmem [resolvable:$true] %s102_s27 }
  0x69   :  { %p2091_p7 = scmp.lt.u32.totalorder %s2087_s26, %s2449_s10 }
  0x6b   :  { %p2093_p8 = pnand %p2091_p7, %p2088_p6 }
  0x6d   :  { %2096 = shalt.err (!%p2093_p8)
}
  0x6e   :  { %s2097_s15 = scalar_lea.vmem %s103_s27, 2048  ;;  %p2102_p10 = scmp.lt.s32.totalorder %s103_s27, %s103_s27 }
  0x6f   :  { %p2098_p9 = scmp.ne.s32.totalorder %s103_s27, %s2097_s15  ;;  %p2103_p11 = scmp.lt.s32.totalorder %s2097_s15, %s2097_s15 }
  0x71   :  { %p2104_p12 = por %p2103_p11, %p2102_p10 }
  0x73   :  { %p2105_p13 = pnand %p2104_p12, %p2098_p9 }
  0x75   :  { %2108 = shalt.err (!%p2105_p13)
}
  0x76   :  { %108 = dma.hbm_to_vmem [thread:$0]  %s2449_s10, 2048, %s103_s27, [#allocation11], %s2122_s5, %s2122_s5, %s2123_s18  }
  0x77   :  { %2109 = dma.done.wait [#allocation3], 128  }
  0x78   :  { %2110 = vsyncadd [#allocation3], 4294967168 }
  0x79   :  { %2111 = dma.done.wait [#allocation5], 25344  }
  0x7a   :  { %2112 = vsyncadd [#allocation5], 4294941952 }
  0x7b   :  { %2113 = dma.done.wait [#allocation8], 16448  }
  0x7c   :  { %2114 = vsyncadd [#allocation8], 4294950848 }
  0x7d   :  { %2115 = dma.done.wait [#allocation11], 6144  }
  0x7e   :  { %2116 = vsyncadd [#allocation11], 4294961152  ;;  %v2132_v0 = vmov 0.0|0.0   ;;  %v2133_v1 = vmov 0.0   ;;  %vm2134_vm0 = vmmov 0   ;;  %vm145_vm1 = vcmask 1041408  }
  0x7f   :  { %1537 = vmatprep.subr.bf16.mxu1 %v2132_v0  ;;  %219 = vmatprep.mubr.f32.mxu0 %v2133_v1  ;;  %vm2135_vm2 = vmmov 1   ;;  %v2303_v3 = vld [vmem:[#allocation2] sm:$0xff]  ;;  %v134_v4 = vld [vmem:[#allocation4 + $0x8] sm:$0xff]  ;;  %v137_v5 = vld [vmem:[#allocation4 + $0x20] sm:$0x3]  ;;  %s2136_s10 = smov 126  }
  0x80   :  { %1493 = vmatprep.mubr.msk.f32.mxu1 %vm2134_vm0, %v2133_v1  ;;  %vm2299_vm3 = vmpackc.low %vm145_vm1, %vm2135_vm2  ;;  %140 = vrot.lane.b32.xlu0 %v2303_v3, %s2136_s10  ;;  %v1531_v6 = vpack.c.bf16 %v137_v5, %v134_v4  ;;  %v133_v7 = vld [vmem:[#allocation4] sm:$0xff]  ;;  %v136_v8 = vld [vmem:[#allocation4 + $0x18] sm:$0x3]  ;;  %vm142_vm4 = vcmask 80896  }
  0x81   :  { %v135_v9 = vld [vmem:[#allocation4 + $0x10] sm:$0xff]  ;;  %v1534_v10 = vpack.c.bf16 %v136_v8, %v133_v7  ;;  %v138_v11 = vld [vmem:[#allocation4 + $0x28] sm:$0x3]  ;;  %v324_v12 = vld [vmem:[#allocation6 + $0x8] sm:$0xff] }
  0x82   :  { %v328_v13 = vld [vmem:[#allocation6 + $0x28] sm:$0xff]  ;;  %1533 = vmatprep.subr.msk.bf16.mxu0 %vm2299_vm3, %v1531_v6  ;;  %v1538_v14 = vpack.c.bf16 %v138_v11, %v135_v9  ;;  %v323_v19 = vld [vmem:[#allocation6] sm:$0xff] }
  0x83   :  { %v1541_v15 = vpack.c.bf16 %v328_v13, %v324_v12  ;;  %1536 = vmatpush1.bf16.msk.msra.mxu0 %vm2299_vm3, %v1534_v10  ;;  %v452_v16 = vld [vmem:[#allocation6 + $0x408] sm:$0xff]  ;;  %v327_v20 = vld [vmem:[#allocation6 + $0x20] sm:$0xff] }
  0x84   :  { %1540 = vmatpush3.bf16.msk.msra.mxu1 %vm2299_vm3, %v1538_v14  ;;  %v456_v17 = vld [vmem:[#allocation6 + $0x428] sm:$0xff]  ;;  %v451_v22 = vld [vmem:[#allocation6 + $0x400] sm:$0xff]  ;;  %v1543_v27 = vpack.c.bf16 %v327_v20, %v323_v19 }
  0x85   :  { %1542 = vmatprep.subr.bf16.mxu0 %v1541_v15  ;;  %v1605_v18 = vpack.c.bf16 %v456_v17, %v452_v16  ;;  %v332_v21 = vld [vmem:[#allocation6 + $0x48] sm:$0xff]  ;;  %v455_v23 = vld [vmem:[#allocation6 + $0x420] sm:$0xff] }
  0x86   :  { %v336_v24 = vld [vmem:[#allocation6 + $0x68] sm:$0xff]  ;;  %v331_v28 = vld [vmem:[#allocation6 + $0x40] sm:$0xff]  ;;  %v1607_v30 = vpack.c.bf16 %v455_v23, %v451_v22 }
  0x87   :  { %1606 = vmatprep.subr.bf16.mxu1 %v1605_v18  ;;  %v460_v25 = vld [vmem:[#allocation6 + $0x448] sm:$0xff]  ;;  %v335_v29 = vld [vmem:[#allocation6 + $0x60] sm:$0xff]  ;;  %v1545_v31 = vpack.c.bf16 %v336_v24, %v332_v21 }
  0x88   :  { %v464_v26 = vld [vmem:[#allocation6 + $0x468] sm:$0xff]  ;;  %v459_v34 = vld [vmem:[#allocation6 + $0x440] sm:$0xff]  ;;  %v1547_v40 = vpack.c.bf16 %v335_v29, %v331_v28 }
  0x89   :  { %v340_v32 = vld [vmem:[#allocation6 + $0x88] sm:$0xff]  ;;  %v1609_v33 = vpack.c.bf16 %v464_v26, %v460_v25  ;;  %v463_v35 = vld [vmem:[#allocation6 + $0x460] sm:$0xff] }
  0x8a   :  { %v344_v37 = vld [vmem:[#allocation6 + $0xa8] sm:$0xff]  ;;  %v339_v41 = vld [vmem:[#allocation6 + $0x80] sm:$0xff]  ;;  %v1611_v43 = vpack.c.bf16 %v463_v35, %v459_v34 }
  0x8b   :  { %v468_v38 = vld [vmem:[#allocation6 + $0x488] sm:$0xff]  ;;  %v343_v42 = vld [vmem:[#allocation6 + $0xa0] sm:$0xff]  ;;  %v1549_v44 = vpack.c.bf16 %v344_v37, %v340_v32 }
  0x8c   :  { %v472_v39 = vld [vmem:[#allocation6 + $0x4a8] sm:$0xff]  ;;  %v467_v47 = vld [vmem:[#allocation6 + $0x480] sm:$0xff]  ;;  %v1551_v52 = vpack.c.bf16 %v343_v42, %v339_v41 }
  0x8d   :  { %v348_v45 = vld [vmem:[#allocation6 + $0xc8] sm:$0xff]  ;;  %v1613_v46 = vpack.c.bf16 %v472_v39, %v468_v38  ;;  %v471_v48 = vld [vmem:[#allocation6 + $0x4a0] sm:$0xff] }
  0x8e   :  { %v352_v49 = vld [vmem:[#allocation6 + $0xe8] sm:$0xff]  ;;  %v347_v53 = vld [vmem:[#allocation6 + $0xc0] sm:$0xff]  ;;  %v1615_v55 = vpack.c.bf16 %v471_v48, %v467_v47 }
  0x8f   :  { %v476_v50 = vld [vmem:[#allocation6 + $0x4c8] sm:$0xff]  ;;  %v351_v54 = vld [vmem:[#allocation6 + $0xe0] sm:$0xff]  ;;  %v1553_v56 = vpack.c.bf16 %v352_v49, %v348_v45 }
  0x90   :  { %v480_v51 = vld [vmem:[#allocation6 + $0x4e8] sm:$0xff]  ;;  %v475_v59 = vld [vmem:[#allocation6 + $0x4c0] sm:$0xff]  ;;  %v1555_v2 = vpack.c.bf16 %v351_v54, %v347_v53 }
  0x91   :  { %v356_v57 = vld [vmem:[#allocation6 + $0x108] sm:$0xff]  ;;  %v1617_v58 = vpack.c.bf16 %v480_v51, %v476_v50  ;;  %v479_v60 = vld [vmem:[#allocation6 + $0x4e0] sm:$0xff] }
  0x92   :  { %v360_v61 = vld [vmem:[#allocation6 + $0x128] sm:$0xff]  ;;  %v355_v4 = vld [vmem:[#allocation6 + $0x100] sm:$0xff]  ;;  %v1619_v6 = vpack.c.bf16 %v479_v60, %v475_v59 }
  0x93   :  { %v484_v62 = vld [vmem:[#allocation6 + $0x508] sm:$0xff]  ;;  %v359_v5 = vld [vmem:[#allocation6 + $0x120] sm:$0xff]  ;;  %v1557_v7 = vpack.c.bf16 %v360_v61, %v356_v57 }
  0x94   :  { %v488_v63 = vld [vmem:[#allocation6 + $0x528] sm:$0xff]  ;;  %v483_v10 = vld [vmem:[#allocation6 + $0x500] sm:$0xff]  ;;  %v1559_v15 = vpack.c.bf16 %v359_v5, %v355_v4 }
  0x95   :  { %v364_v8 = vld [vmem:[#allocation6 + $0x148] sm:$0xff]  ;;  %v1621_v9 = vpack.c.bf16 %v488_v63, %v484_v62  ;;  %v487_v11 = vld [vmem:[#allocation6 + $0x520] sm:$0xff] }
  0x96   :  { %v368_v12 = vld [vmem:[#allocation6 + $0x168] sm:$0xff]  ;;  %v363_v16 = vld [vmem:[#allocation6 + $0x140] sm:$0xff]  ;;  %v1623_v18 = vpack.c.bf16 %v487_v11, %v483_v10 }
  0x97   :  { %v492_v13 = vld [vmem:[#allocation6 + $0x548] sm:$0xff]  ;;  %v367_v17 = vld [vmem:[#allocation6 + $0x160] sm:$0xff]  ;;  %v1561_v19 = vpack.c.bf16 %v368_v12, %v364_v8 }
  0x98   :  { %v496_v14 = vld [vmem:[#allocation6 + $0x568] sm:$0xff]  ;;  %v491_v22 = vld [vmem:[#allocation6 + $0x540] sm:$0xff] }
  0x99   :  { %v372_v20 = vld [vmem:[#allocation6 + $0x188] sm:$0xff]  ;;  %v1625_v21 = vpack.c.bf16 %v496_v14, %v492_v13  ;;  %v495_v23 = vld [vmem:[#allocation6 + $0x560] sm:$0xff] }
  0x9a   :  { %v376_v24 = vld [vmem:[#allocation6 + $0x1a8] sm:$0xff]  ;;  %v371_v28 = vld [vmem:[#allocation6 + $0x180] sm:$0xff] }
  0x9b   :  { %v500_v25 = vld [vmem:[#allocation6 + $0x588] sm:$0xff]  ;;  %v375_v29 = vld [vmem:[#allocation6 + $0x1a0] sm:$0xff] }
  0x9c   :  { %v504_v26 = vld [vmem:[#allocation6 + $0x5a8] sm:$0xff]  ;;  %v499_v34 = vld [vmem:[#allocation6 + $0x580] sm:$0xff]  ;;  %v1567_v39 = vpack.c.bf16 %v375_v29, %v371_v28 }
  0x9d   :  { %v380_v32 = vld [vmem:[#allocation6 + $0x1c8] sm:$0xff]  ;;  %v503_v35 = vld [vmem:[#allocation6 + $0x5a0] sm:$0xff] }
  0x9e   :  { %v508_v37 = vld [vmem:[#allocation6 + $0x5c8] sm:$0xff]  ;;  %v1631_v41 = vpack.c.bf16 %v503_v35, %v499_v34  ;;  %v507_v45 = vld [vmem:[#allocation6 + $0x5c0] sm:$0xff] }
  0x9f   :  { %v512_v38 = vld [vmem:[#allocation6 + $0x5e8] sm:$0xff]  ;;  %v391_v53 = vld [vmem:[#allocation6 + $0x220] sm:$0xff] }
  0xa0   :  { %v388_v47 = vld [vmem:[#allocation6 + $0x208] sm:$0xff]  ;;  %v399_v59 = vld [vmem:[#allocation6 + $0x260] sm:$0xff] }
  0xa1   :  { %v392_v48 = vld [vmem:[#allocation6 + $0x228] sm:$0xff]  ;;  %v407_v4 = vld [vmem:[#allocation6 + $0x2a0] sm:$0xff] }
  0xa2   :  { %v1573_v51 = vpack.c.bf16 %v392_v48, %v388_v47  ;;  %v396_v54 = vld [vmem:[#allocation6 + $0x248] sm:$0xff]  ;;  %v415_v10 = vld [vmem:[#allocation6 + $0x2e0] sm:$0xff] }
  0xa3   :  { %v404_v60 = vld [vmem:[#allocation6 + $0x288] sm:$0xff]  ;;  %v439_v28 = vld [vmem:[#allocation6 + $0x3a0] sm:$0xff] }
  0xa4   :  { %v408_v61 = vld [vmem:[#allocation6 + $0x2a8] sm:$0xff]  ;;  %v447_v34 = vld [vmem:[#allocation6 + $0x3e0] sm:$0xff] }
  0xa5   :  { %v1581_v63 = vpack.c.bf16 %v408_v61, %v404_v60  ;;  %v412_v5 = vld [vmem:[#allocation6 + $0x2c8] sm:$0xff]  ;;  %v929_v60 = vld [vmem:[#allocation9 + $0x38] sm:$0xff] }
  0xa6   :  { %v420_v11 = vld [vmem:[#allocation6 + $0x308] sm:$0xff] }
  0xa7   :  { %v424_v12 = vld [vmem:[#allocation6 + $0x328] sm:$0xff] }
  0xa8   :  { %v1589_v14 = vpack.c.bf16 %v424_v12, %v420_v11  ;;  %v296_v47 = vld [vmem:[%s2441_s2] sm:$0x7]  ;;  %v2139_v11 = vmov 1.0  }
  0xf2   :  { %v141_v36 = vpop.permute.xlu0 %140 }
  0xf3   :  { %1420 = vmatmul.mubr.msk.f32.vlgmr.msra.gmra.mrb[0].mxu0 %vm142_vm4, %v141_v36  ;;  %1494 = vmatmul.mubr.msk.f32.vlgmr.msra.gmra.mrb[0].mxu1 %vm142_vm4, %v141_v36  ;;  %v384_v36 = vld [vmem:[#allocation6 + $0x1e8] sm:$0xff] }
  0xf4   :  { %1544 = vmatpush1.bf16.msra.mxu0 %v1543_v27  ;;  %1608 = vmatpush1.bf16.msra.mxu1 %v1607_v30  ;;  %v1563_v27 = vpack.c.bf16 %v367_v17, %v363_v16  ;;  %v1627_v30 = vpack.c.bf16 %v495_v23, %v491_v22  ;;  %v1569_v42 = vpack.c.bf16 %v384_v36, %v380_v32  ;;  %v423_v16 = vld [vmem:[#allocation6 + $0x320] sm:$0xff]  ;;  %v428_v17 = vld [vmem:[#allocation6 + $0x348] sm:$0xff]  ;;  %v326_v36 = vld [vmem:[#allocation6 + $0x18] sm:$0xff] }
  0xf5   :  { %1546 = vmatprep.subr.bf16.mxu0 %v1545_v31  ;;  %1610 = vmatprep.subr.bf16.mxu1 %v1609_v33  ;;  %v1565_v31 = vpack.c.bf16 %v376_v24, %v372_v20  ;;  %v1629_v33 = vpack.c.bf16 %v504_v26, %v500_v25  ;;  %v431_v22 = vld [vmem:[#allocation6 + $0x360] sm:$0xff]  ;;  %v436_v23 = vld [vmem:[#allocation6 + $0x388] sm:$0xff] }
  0xf6   :  { %695 = vmatprep.mubr.f32.mxu1 %v2133_v1  ;;  %v440_v24 = vld [vmem:[#allocation6 + $0x3a8] sm:$0xff] }
  0xf7   :  { %v1597_v26 = vpack.c.bf16 %v440_v24, %v436_v23  ;;  %v354_v23 = vld [vmem:[#allocation6 + $0xf8] sm:$0xff] }
  0xf8   :  { %1548 = vmatpush1.bf16.msra.mxu0 %v1547_v40  ;;  %1612 = vmatpush1.bf16.msra.mxu1 %v1611_v43  ;;  %v379_v40 = vld [vmem:[#allocation6 + $0x1c0] sm:$0xff] }
  0xf9   :  { %1550 = vmatprep.subr.bf16.mxu0 %v1549_v44  ;;  %1614 = vmatprep.subr.bf16.mxu1 %v1613_v46  ;;  %v383_v43 = vld [vmem:[#allocation6 + $0x1e0] sm:$0xff]  ;;  %v1633_v44 = vpack.c.bf16 %v512_v38, %v508_v37  ;;  %v330_v37 = vld [vmem:[#allocation6 + $0x38] sm:$0xff] }
  0xfa   :  { %v511_v46 = vld [vmem:[#allocation6 + $0x5e0] sm:$0xff]  ;;  %v1571_v49 = vpack.c.bf16 %v383_v43, %v379_v40  ;;  %v1637_v38 = vpack.c.bf16 %v330_v37, %v326_v36  ;;  %v2138_v40 = vmov 1  }
  0xfb   :  { %v1635_v50 = vpack.c.bf16 %v511_v46, %v507_v45  ;;  %1953 = vset.pattern.permute.xlu1 %v2138_v40 }
  0xfc   :  { %1552 = vmatpush1.bf16.msra.mxu0 %v1551_v52  ;;  %1616 = vmatpush1.bf16.msra.mxu1 %v1615_v55  ;;  %v387_v52 = vld [vmem:[#allocation6 + $0x200] sm:$0xff]  ;;  %v400_v55 = vld [vmem:[#allocation6 + $0x268] sm:$0xff] }
  0xfd   :  { %1554 = vmatprep.subr.bf16.mxu0 %v1553_v56  ;;  %1618 = vmatprep.subr.bf16.mxu1 %v1617_v58  ;;  %v1575_v56 = vpack.c.bf16 %v391_v53, %v387_v52  ;;  %v1577_v57 = vpack.c.bf16 %v400_v55, %v396_v54  ;;  %v395_v58 = vld [vmem:[#allocation6 + $0x240] sm:$0xff]  ;;  %v334_v52 = vld [vmem:[#allocation6 + $0x58] sm:$0xff] }
  0xfe   :  { %v1579_v62 = vpack.c.bf16 %v399_v59, %v395_v58  ;;  %845 = vperm.xlu1 %1953, %v2303_v3   ;;  %v338_v54 = vld [vmem:[#allocation6 + $0x78] sm:$0xff]  ;;  %v922_v55 = vld [vmem:[#allocation9] sm:$0xff]  ;;  %v927_v59 = vld [vmem:[#allocation9 + $0x28] sm:$0xff] }
  0xff   :  { %v1737_v12 = vpack.c.bf16 %v929_v60, %v927_v59  ;;  %v365_v59 = vld [vmem:[#allocation6 + $0x150] sm:$0xff] }
 0x100   :  { %1556 = vmatpush1.bf16.msra.mxu0 %v1555_v2  ;;  %1620 = vmatpush1.bf16.msra.mxu1 %v1619_v6  ;;  %v403_v2 = vld [vmem:[#allocation6 + $0x280] sm:$0xff]  ;;  %v416_v6 = vld [vmem:[#allocation6 + $0x2e8] sm:$0xff]  ;;  %v369_v60 = vld [vmem:[#allocation6 + $0x170] sm:$0xff] }
 0x101   :  { %1558 = vmatprep.subr.bf16.mxu0 %v1557_v7  ;;  %1622 = vmatprep.subr.bf16.mxu1 %v1621_v9  ;;  %v1583_v7 = vpack.c.bf16 %v407_v4, %v403_v2  ;;  %v1585_v8 = vpack.c.bf16 %v416_v6, %v412_v5  ;;  %v411_v9 = vld [vmem:[#allocation6 + $0x2c0] sm:$0xff]  ;;  %v337_v2 = vld [vmem:[#allocation6 + $0x70] sm:$0xff] }
 0x102   :  { %v1587_v13 = vpack.c.bf16 %v415_v10, %v411_v9  ;;  %v346_v9 = vld [vmem:[#allocation6 + $0xb8] sm:$0xff] }
 0x104   :  { %1560 = vmatpush1.bf16.msra.mxu0 %v1559_v15  ;;  %1624 = vmatpush1.bf16.msra.mxu1 %v1623_v18  ;;  %v419_v15 = vld [vmem:[#allocation6 + $0x300] sm:$0xff]  ;;  %v432_v18 = vld [vmem:[#allocation6 + $0x368] sm:$0xff] }
 0x105   :  { %1562 = vmatprep.subr.bf16.mxu0 %v1561_v19  ;;  %1626 = vmatprep.subr.bf16.mxu1 %v1625_v21  ;;  %v1591_v19 = vpack.c.bf16 %v423_v16, %v419_v15  ;;  %v1593_v20 = vpack.c.bf16 %v432_v18, %v428_v17  ;;  %v427_v21 = vld [vmem:[#allocation6 + $0x340] sm:$0xff]  ;;  %v931_v17 = vld [vmem:[#allocation9 + $0x48] sm:$0xff] }
 0x106   :  { %v1595_v25 = vpack.c.bf16 %v431_v22, %v427_v21  ;;  %v933_v18 = vld [vmem:[#allocation9 + $0x58] sm:$0xff]  ;;  %v345_v21 = vld [vmem:[#allocation6 + $0xb0] sm:$0xff] }
 0x107   :  { %v350_v22 = vld [vmem:[#allocation6 + $0xd8] sm:$0xff] }
 0x108   :  { %1564 = vmatpush1.bf16.msra.mxu0 %v1563_v27  ;;  %1628 = vmatpush1.bf16.msra.mxu1 %v1627_v30  ;;  %v435_v27 = vld [vmem:[#allocation6 + $0x380] sm:$0xff]  ;;  %v444_v30 = vld [vmem:[#allocation6 + $0x3c8] sm:$0xff] }
 0x109   :  { %1566 = vmatprep.subr.bf16.mxu0 %v1565_v31  ;;  %1630 = vmatprep.subr.bf16.mxu1 %v1629_v33  ;;  %v1599_v29 = vpack.c.bf16 %v439_v28, %v435_v27  ;;  %v448_v31 = vld [vmem:[#allocation6 + $0x3e8] sm:$0xff]  ;;  %v443_v33 = vld [vmem:[#allocation6 + $0x3c0] sm:$0xff]  ;;  %v932_v27 = vld [vmem:[#allocation9 + $0x50] sm:$0xff] }
 0x10a   :  { %v1601_v32 = vpack.c.bf16 %v448_v31, %v444_v30  ;;  %v1603_v35 = vpack.c.bf16 %v447_v34, %v443_v33  ;;  %v937_v30 = vld [vmem:[#allocation9 + $0x78] sm:$0xff]  ;;  %v1649_v31 = vpack.c.bf16 %v354_v23, %v350_v22  ;;  %v353_v33 = vld [vmem:[#allocation6 + $0xf0] sm:$0xff] }
 0x10b   :  { %v358_v34 = vld [vmem:[#allocation6 + $0x118] sm:$0xff]  ;;  %v951_v22 = vld [vmem:[#allocation9 + $0xe8] sm:$0xff] }
 0x10c   :  { %1568 = vmatpush1.bf16.msra.mxu0 %v1567_v39  ;;  %1632 = vmatpush1.bf16.msra.mxu1 %v1631_v41  ;;  %v2137_v39 = vmov 0   ;;  %v923_v41 = vld [vmem:[#allocation9 + $0x8] sm:$0xff]  ;;  %v953_v23 = vld [vmem:[#allocation9 + $0xf8] sm:$0xff] }
 0x10d   :  { %1570 = vmatprep.subr.bf16.mxu0 %v1569_v42  ;;  %1634 = vmatprep.subr.bf16.mxu1 %v1633_v44  ;;  %v925_v42 = vld [vmem:[#allocation9 + $0x18] sm:$0xff]  ;;  %v298_v44 = vlaneseq }
 0x10e   :  { %1952 = vset.pattern.permute.xlu0 %v2137_v39  ;;  %v1733_v43 = vpack.c.bf16 %v925_v42, %v923_v41  ;;  %v936_v39 = vld [vmem:[#allocation9 + $0x70] sm:$0xff]  ;;  %v939_v41 = vld [vmem:[#allocation9 + $0x88] sm:$0xff]  ;;  %v941_v42 = vld [vmem:[#allocation9 + $0x98] sm:$0xff] }
 0x10f   :  { %516 = vperm.xlu0 %1952, %v2303_v3   ;;  %v2315_v45 = vshrl.u32 %v298_v44, 7  ;;  %v357_v44 = vld [vmem:[#allocation6 + $0x110] sm:$0xff] }
 0x110   :  { %1572 = vmatpush1.bf16.msra.mxu0 %v1571_v49  ;;  %1636 = vmatpush1.bf16.msra.mxu1 %v1635_v50  ;;  %v325_v49 = vld [vmem:[#allocation6 + $0x10] sm:$0xff] }
 0x111   :  { %1574 = vmatprep.subr.bf16.mxu0 %v1573_v51  ;;  %1638 = vmatprep.subr.bf16.mxu1 %v1637_v38  ;;  %v2318_v46 = vsub.s32 2, %v2315_v45  ;;  %v2324_v48 = vsub.s32 1, %v2315_v45  ;;  %v2327_v3 = vsub.s32 0, %v2315_v45  ;;  %v329_v50 = vld [vmem:[#allocation6 + $0x30] sm:$0xff]  ;;  %v934_v38 = vld [vmem:[#allocation9 + $0x60] sm:$0xff] }
 0x112   :  { %v1639_v58 = vpack.c.bf16 %v329_v50, %v325_v49  ;;  %v366_v49 = vld [vmem:[#allocation6 + $0x158] sm:$0xff] }
 0x113   :  { %1954 = vset.pattern.permute.xlu0 %v2138_v40  ;;  %v309_v51 = vrot.slane %v296_v47, %v2318_v46  ;;  %v305_v53 = vrot.slane %v296_v47, %v2324_v48  ;;  %v370_v50 = vld [vmem:[#allocation6 + $0x178] sm:$0xff] }
 0x114   :  { %1576 = vmatpush1.bf16.msra.mxu0 %v1575_v56  ;;  %v924_v56 = vld [vmem:[#allocation9 + $0x10] sm:$0xff] }
 0x115   :  { %1578 = vmatprep.subr.bf16.mxu0 %v1577_v57  ;;  %v301_v57 = vrot.slane %v296_v47, %v2327_v3  ;;  %v1735_v10 = vpack.c.bf16 %v924_v56, %v922_v55  ;;  %v361_v47 = vld [vmem:[#allocation6 + $0x130] sm:$0xff] }
 0x116   :  { %v1655_v55 = vpack.c.bf16 %v361_v47, %v357_v44  ;;  %v943_v56 = vld [vmem:[#allocation9 + $0xa8] sm:$0xff]  ;;  %v956_v44 = vld [vmem:[#allocation9 + $0x110] sm:$0xff] }
 0x118   :  { %1580 = vmatpush1.bf16.msra.mxu0 %v1579_v62 }
 0x119   :  { %1582 = vmatprep.subr.bf16.mxu0 %v1581_v63  ;;  %v333_v63 = vld [vmem:[#allocation6 + $0x50] sm:$0xff] }
 0x11a   :  { %v1643_v16 = vpack.c.bf16 %v337_v2, %v333_v63 }
 0x11c   :  { %1584 = vmatpush1.bf16.msra.mxu0 %v1583_v7  ;;  %v1641_v7 = vpack.c.bf16 %v338_v54, %v334_v52  ;;  %v1749_v52 = vpack.c.bf16 %v941_v42, %v939_v41  ;;  %v940_v54 = vld [vmem:[#allocation9 + $0x90] sm:$0xff] }
 0x11d   :  { %1586 = vmatprep.subr.bf16.mxu0 %v1585_v8  ;;  %v342_v8 = vld [vmem:[#allocation6 + $0x98] sm:$0xff] }
 0x120   :  { %1588 = vmatpush1.bf16.msra.mxu0 %v1587_v13  ;;  %v926_v13 = vld [vmem:[#allocation9 + $0x20] sm:$0xff] }
 0x121   :  { %1590 = vmatprep.subr.bf16.mxu0 %v1589_v14  ;;  %v928_v14 = vld [vmem:[#allocation9 + $0x30] sm:$0xff] }
 0x122   :  { %v1739_v24 = vpack.c.bf16 %v928_v14, %v926_v13  ;;  %v377_v13 = vld [vmem:[#allocation6 + $0x1b0] sm:$0xff]  ;;  %v382_v14 = vld [vmem:[#allocation6 + $0x1d8] sm:$0xff] }
 0x124   :  { %1592 = vmatpush1.bf16.msra.mxu0 %v1591_v19  ;;  %v1645_v19 = vpack.c.bf16 %v346_v9, %v342_v8  ;;  %v947_v8 = vld [vmem:[#allocation9 + $0xc8] sm:$0xff]  ;;  %v949_v9 = vld [vmem:[#allocation9 + $0xd8] sm:$0xff] }
 0x125   :  { %1594 = vmatprep.subr.bf16.mxu0 %v1593_v20  ;;  %v341_v20 = vld [vmem:[#allocation6 + $0x90] sm:$0xff] }
 0x126   :  { %v1647_v28 = vpack.c.bf16 %v345_v21, %v341_v20  ;;  %v948_v20 = vld [vmem:[#allocation9 + $0xd0] sm:$0xff] }
 0x128   :  { %1596 = vmatpush1.bf16.msra.mxu0 %v1595_v25  ;;  %v1741_v25 = vpack.c.bf16 %v933_v18, %v931_v17  ;;  %v1757_v18 = vpack.c.bf16 %v949_v9, %v947_v8 }
 0x129   :  { %1598 = vmatprep.subr.bf16.mxu0 %v1597_v26  ;;  %v930_v26 = vld [vmem:[#allocation9 + $0x40] sm:$0xff] }
 0x12a   :  { %v1743_v36 = vpack.c.bf16 %v932_v27, %v930_v26  ;;  %v385_v26 = vld [vmem:[#allocation6 + $0x1f0] sm:$0xff]  ;;  %v390_v27 = vld [vmem:[#allocation6 + $0x218] sm:$0xff] }
 0x12c   :  { %1600 = vmatpush1.bf16.msra.mxu0 %v1599_v29  ;;  %v935_v29 = vld [vmem:[#allocation9 + $0x68] sm:$0xff] }
 0x12d   :  { %1602 = vmatprep.subr.bf16.mxu0 %v1601_v32  ;;  %v349_v32 = vld [vmem:[#allocation6 + $0xd0] sm:$0xff]  ;;  %v1745_v37 = vpack.c.bf16 %v937_v30, %v935_v29  ;;  %v1761_v30 = vpack.c.bf16 %v953_v23, %v951_v22 }
 0x12e   :  { %v1651_v40 = vpack.c.bf16 %v353_v33, %v349_v32  ;;  %v952_v32 = vld [vmem:[#allocation9 + $0xf0] sm:$0xff] }
 0x130   :  { %1604 = vmatpush1.bf16.msra.mxu0 %v1603_v35  ;;  %v362_v35 = vld [vmem:[#allocation6 + $0x138] sm:$0xff] }
 0x131   :  { %1734 = vmatprep.subr.bf16.mxu0 %v1733_v43  ;;  %v1653_v43 = vpack.c.bf16 %v362_v35, %v358_v34  ;;  %v955_v34 = vld [vmem:[#allocation9 + $0x108] sm:$0xff]  ;;  %v957_v35 = vld [vmem:[#allocation9 + $0x118] sm:$0xff] }
 0x132   :  { %v1765_v42 = vpack.c.bf16 %v957_v35, %v955_v34 }
 0x1c6   :  { %v221_v61 = vpop.f32.mrb[0].mxu0  ;;  %v292_v62 = vpop.f32.mrb[0].mxu1 }
 0x1c7   :  { %vm2332_vm5 = vcmp.eq.f32.partialorder %v292_v62, %v309_v51  ;;  %v223_v5 = vpop.f32.mrb[1].mxu0  ;;  %v1495_v6 = vpop.f32.mrb[1].mxu1  ;;  %vm2339_vm7 = vcmp.eq.f32.partialorder %v221_v61, %v301_v57  ;;  %v1747_v51 = vpack.c.bf16 %v936_v39, %v934_v38  ;;  %v945_v57 = vld [vmem:[#allocation9 + $0xb8] sm:$0xff]  ;;  %v393_v38 = vld [vmem:[#allocation6 + $0x230] sm:$0xff] }
 0x1c8   :  { %vm314_vm6 = vcmp.eq.f32.partialorder %v223_v5, %v305_v53  ;;  %1428 = vmatmul.mubr.msk.f32.vlgmr.msra.gmra.mrb[2].mxu1 %vm2332_vm5, %v2139_v11  ;;  %v938_v53 = vld [vmem:[#allocation9 + $0x80] sm:$0xff]  ;;  %v374_v61 = vld [vmem:[#allocation6 + $0x198] sm:$0xff]  ;;  %v1753_v2 = vpack.c.bf16 %v945_v57, %v943_v56 }
 0x1c9   :  { %1640 = vmatpush1.bf16.msra.mxu1 %v1639_v58  ;;  %1426 = vmatprep.mubr.msk.f32.mxu0 %vm314_vm6, %v2139_v11  ;;  %v1657_v58 = vpack.c.bf16 %v370_v50, %v366_v49  ;;  %v378_v62 = vld [vmem:[#allocation6 + $0x1b8] sm:$0xff]  ;;  %v1751_v63 = vpack.c.bf16 %v940_v54, %v938_v53  ;;  %v942_v5 = vld [vmem:[#allocation9 + $0xa0] sm:$0xff]  ;;  %v959_v49 = vld [vmem:[#allocation9 + $0x128] sm:$0xff] }
 0x1ca   :  { %1429 = vmatprep.mubr.msk.f32.mxu1 %vm314_vm6, %v2139_v11  ;;  %1427 = vmatmul.mubr.msk.f32.vlgmr.msra.gmra.mrb[2].mxu0 %vm2339_vm7, %v2139_v11  ;;  %v944_v6 = vld [vmem:[#allocation9 + $0xb0] sm:$0xff]  ;;  %v961_v50 = vld [vmem:[#allocation9 + $0x138] sm:$0xff] }
 0x1cb   :  { %1642 = vmatprep.subr.bf16.mxu1 %v1641_v7  ;;  %1736 = vmatpush1.bf16.msra.mxu0 %v1735_v10  ;;  %v1659_v7 = vpack.c.bf16 %v369_v60, %v365_v59  ;;  %v1661_v10 = vpack.c.bf16 %v378_v62, %v374_v61  ;;  %v1755_v17 = vpack.c.bf16 %v944_v6, %v942_v5  ;;  %v398_v39 = vld [vmem:[#allocation6 + $0x258] sm:$0xff]  ;;  %v401_v53 = vld [vmem:[#allocation6 + $0x270] sm:$0xff] }
 0x1cc   :  { %1738 = vmatprep.subr.bf16.mxu0 %v1737_v12  ;;  %v373_v12 = vld [vmem:[#allocation6 + $0x190] sm:$0xff]  ;;  %v406_v54 = vld [vmem:[#allocation6 + $0x298] sm:$0xff]  ;;  %v1769_v57 = vpack.c.bf16 %v961_v50, %v959_v49 }
 0x1cd   :  { %1644 = vmatpush1.bf16.msra.mxu1 %v1643_v16  ;;  %v386_v16 = vld [vmem:[#allocation6 + $0x1f8] sm:$0xff]  ;;  %v1663_v21 = vpack.c.bf16 %v377_v13, %v373_v12  ;;  %v963_v61 = vld [vmem:[#allocation9 + $0x148] sm:$0xff] }
 0x1ce   :  { %1646 = vmatprep.subr.bf16.mxu1 %v1645_v19  ;;  %v946_v19 = vld [vmem:[#allocation9 + $0xc0] sm:$0xff]  ;;  %v960_v59 = vld [vmem:[#allocation9 + $0x130] sm:$0xff]  ;;  %v965_v62 = vld [vmem:[#allocation9 + $0x158] sm:$0xff] }
 0x1cf   :  { %1740 = vmatpush1.bf16.msra.mxu0 %v1739_v24  ;;  %v1665_v24 = vpack.c.bf16 %v386_v16, %v382_v14  ;;  %v1759_v29 = vpack.c.bf16 %v948_v20, %v946_v19  ;;  %v409_v5 = vld [vmem:[#allocation6 + $0x2b0] sm:$0xff]  ;;  %v414_v6 = vld [vmem:[#allocation6 + $0x2d8] sm:$0xff]  ;;  %v1773_v9 = vpack.c.bf16 %v965_v62, %v963_v61 }
 0x1d0   :  { %1742 = vmatprep.subr.bf16.mxu0 %v1741_v25  ;;  %v381_v25 = vld [vmem:[#allocation6 + $0x1d0] sm:$0xff]  ;;  %v969_v16 = vld [vmem:[#allocation9 + $0x178] sm:$0xff] }
 0x1d1   :  { %1648 = vmatpush1.bf16.msra.mxu1 %v1647_v28  ;;  %v394_v28 = vld [vmem:[#allocation6 + $0x238] sm:$0xff]  ;;  %v1667_v33 = vpack.c.bf16 %v385_v26, %v381_v25  ;;  %v967_v14 = vld [vmem:[#allocation9 + $0x168] sm:$0xff] }
 0x1d2   :  { %1650 = vmatprep.subr.bf16.mxu1 %v1649_v31  ;;  %v950_v31 = vld [vmem:[#allocation9 + $0xe0] sm:$0xff]  ;;  %v964_v12 = vld [vmem:[#allocation9 + $0x150] sm:$0xff]  ;;  %v1777_v23 = vpack.c.bf16 %v969_v16, %v967_v14 }
 0x1d3   :  { %1744 = vmatpush1.bf16.msra.mxu0 %v1743_v36  ;;  %v1669_v36 = vpack.c.bf16 %v394_v28, %v390_v27  ;;  %v1763_v41 = vpack.c.bf16 %v952_v32, %v950_v31  ;;  %v417_v19 = vld [vmem:[#allocation6 + $0x2f0] sm:$0xff]  ;;  %v422_v20 = vld [vmem:[#allocation6 + $0x318] sm:$0xff] }
 0x1d4   :  { %1746 = vmatprep.subr.bf16.mxu0 %v1745_v37  ;;  %v389_v37 = vld [vmem:[#allocation6 + $0x210] sm:$0xff]  ;;  %v973_v28 = vld [vmem:[#allocation9 + $0x198] sm:$0xff] }
 0x1d5   :  { %1652 = vmatpush1.bf16.msra.mxu1 %v1651_v40  ;;  %v402_v40 = vld [vmem:[#allocation6 + $0x278] sm:$0xff]  ;;  %v1671_v47 = vpack.c.bf16 %v393_v38, %v389_v37  ;;  %v971_v27 = vld [vmem:[#allocation9 + $0x188] sm:$0xff] }
 0x1d6   :  { %1654 = vmatprep.subr.bf16.mxu1 %v1653_v43  ;;  %v954_v43 = vld [vmem:[#allocation9 + $0x100] sm:$0xff]  ;;  %v968_v25 = vld [vmem:[#allocation9 + $0x170] sm:$0xff]  ;;  %v1781_v35 = vpack.c.bf16 %v973_v28, %v971_v27 }
 0x1d7   :  { %1748 = vmatpush1.bf16.msra.mxu0 %v1747_v51  ;;  %v1673_v51 = vpack.c.bf16 %v402_v40, %v398_v39  ;;  %v1767_v56 = vpack.c.bf16 %v956_v44, %v954_v43  ;;  %v425_v31 = vld [vmem:[#allocation6 + $0x330] sm:$0xff]  ;;  %v430_v32 = vld [vmem:[#allocation6 + $0x358] sm:$0xff] }
 0x1d8   :  { %1750 = vmatprep.subr.bf16.mxu0 %v1749_v52  ;;  %v397_v52 = vld [vmem:[#allocation6 + $0x250] sm:$0xff]  ;;  %v438_v40 = vld [vmem:[#allocation6 + $0x398] sm:$0xff] }
 0x1d9   :  { %1656 = vmatpush1.bf16.msra.mxu1 %v1655_v55  ;;  %v410_v55 = vld [vmem:[#allocation6 + $0x2b8] sm:$0xff]  ;;  %v1675_v60 = vpack.c.bf16 %v401_v53, %v397_v52  ;;  %v429_v38 = vld [vmem:[#allocation6 + $0x350] sm:$0xff] }
 0x1da   :  { %1658 = vmatprep.subr.bf16.mxu1 %v1657_v58  ;;  %v958_v58 = vld [vmem:[#allocation9 + $0x120] sm:$0xff]  ;;  %v433_v39 = vld [vmem:[#allocation6 + $0x370] sm:$0xff]  ;;  %v446_v49 = vld [vmem:[#allocation6 + $0x3d8] sm:$0xff] }
 0x1db   :  { %1752 = vmatpush1.bf16.msra.mxu0 %v1751_v63  ;;  %v1677_v63 = vpack.c.bf16 %v410_v55, %v406_v54  ;;  %v1771_v8 = vpack.c.bf16 %v960_v59, %v958_v58  ;;  %v437_v44 = vld [vmem:[#allocation6 + $0x390] sm:$0xff]  ;;  %v450_v50 = vld [vmem:[#allocation6 + $0x3f8] sm:$0xff] }
 0x1dc   :  { %1754 = vmatprep.subr.bf16.mxu0 %v1753_v2  ;;  %v405_v2 = vld [vmem:[#allocation6 + $0x290] sm:$0xff]  ;;  %v1697_v52 = vpack.c.bf16 %v450_v50, %v446_v49  ;;  %v454_v55 = vld [vmem:[#allocation6 + $0x418] sm:$0xff]  ;;  %v974_v50 = vld [vmem:[#allocation9 + $0x1a0] sm:$0xff] }
 0x1dd   :  { %1660 = vmatpush1.bf16.msra.mxu1 %v1659_v7  ;;  %v418_v7 = vld [vmem:[#allocation6 + $0x2f8] sm:$0xff]  ;;  %v1679_v13 = vpack.c.bf16 %v409_v5, %v405_v2  ;;  %v445_v53 = vld [vmem:[#allocation6 + $0x3d0] sm:$0xff] }
 0x1de   :  { %1662 = vmatprep.subr.bf16.mxu1 %v1661_v10  ;;  %v962_v10 = vld [vmem:[#allocation9 + $0x140] sm:$0xff]  ;;  %v449_v54 = vld [vmem:[#allocation6 + $0x3f0] sm:$0xff]  ;;  %v462_v61 = vld [vmem:[#allocation6 + $0x458] sm:$0xff] }
 0x1df   :  { %1756 = vmatpush1.bf16.msra.mxu0 %v1755_v17  ;;  %v1681_v17 = vpack.c.bf16 %v418_v7, %v414_v6  ;;  %v1775_v22 = vpack.c.bf16 %v964_v12, %v962_v10  ;;  %v453_v59 = vld [vmem:[#allocation6 + $0x410] sm:$0xff]  ;;  %v466_v62 = vld [vmem:[#allocation6 + $0x478] sm:$0xff] }
 0x1e0   :  { %1758 = vmatprep.subr.bf16.mxu0 %v1757_v18  ;;  %v413_v18 = vld [vmem:[#allocation6 + $0x2d0] sm:$0xff]  ;;  %v1705_v2 = vpack.c.bf16 %v466_v62, %v462_v61  ;;  %v470_v7 = vld [vmem:[#allocation6 + $0x498] sm:$0xff]  ;;  %v978_v62 = vld [vmem:[#allocation9 + $0x1c0] sm:$0xff] }
 0x1e1   :  { %1664 = vmatpush1.bf16.msra.mxu1 %v1663_v21  ;;  %v426_v21 = vld [vmem:[#allocation6 + $0x338] sm:$0xff]  ;;  %v1683_v26 = vpack.c.bf16 %v417_v19, %v413_v18  ;;  %v461_v5 = vld [vmem:[#allocation6 + $0x450] sm:$0xff] }
 0x1e2   :  { %1666 = vmatprep.subr.bf16.mxu1 %v1665_v24  ;;  %v966_v24 = vld [vmem:[#allocation9 + $0x160] sm:$0xff]  ;;  %v465_v6 = vld [vmem:[#allocation6 + $0x470] sm:$0xff]  ;;  %v478_v14 = vld [vmem:[#allocation6 + $0x4d8] sm:$0xff] }
 0x1e3   :  { %1760 = vmatpush1.bf16.msra.mxu0 %v1759_v29  ;;  %v1685_v29 = vpack.c.bf16 %v426_v21, %v422_v20  ;;  %v1779_v34 = vpack.c.bf16 %v968_v25, %v966_v24  ;;  %v469_v12 = vld [vmem:[#allocation6 + $0x490] sm:$0xff]  ;;  %v482_v16 = vld [vmem:[#allocation6 + $0x4f8] sm:$0xff] }
 0x1e4   :  { %1762 = vmatprep.subr.bf16.mxu0 %v1761_v30  ;;  %v421_v30 = vld [vmem:[#allocation6 + $0x310] sm:$0xff]  ;;  %v1713_v18 = vpack.c.bf16 %v482_v16, %v478_v14  ;;  %v486_v21 = vld [vmem:[#allocation6 + $0x518] sm:$0xff] }
 0x1e5   :  { %1668 = vmatpush1.bf16.msra.mxu1 %v1667_v33  ;;  %v434_v33 = vld [vmem:[#allocation6 + $0x378] sm:$0xff]  ;;  %v477_v19 = vld [vmem:[#allocation6 + $0x4d0] sm:$0xff] }
 0x1e6   :  { %1670 = vmatprep.subr.bf16.mxu1 %v1669_v36  ;;  %v1687_v36 = vpack.c.bf16 %v425_v31, %v421_v30  ;;  %v1689_v37 = vpack.c.bf16 %v434_v33, %v430_v32  ;;  %v481_v20 = vld [vmem:[#allocation6 + $0x4f0] sm:$0xff]  ;;  %v498_v27 = vld [vmem:[#allocation6 + $0x578] sm:$0xff] }
 0x1e7   :  { %1764 = vmatpush1.bf16.msra.mxu0 %v1763_v41  ;;  %v442_v41 = vld [vmem:[#allocation6 + $0x3b8] sm:$0xff]  ;;  %v1715_v15 = vpack.c.bf16 %v481_v20, %v477_v19  ;;  %v485_v24 = vld [vmem:[#allocation6 + $0x510] sm:$0xff] }
 0x1e8   :  { %1766 = vmatprep.subr.bf16.mxu0 %v1765_v42  ;;  %v1691_v42 = vpack.c.bf16 %v433_v39, %v429_v38  ;;  %v1693_v43 = vpack.c.bf16 %v442_v41, %v438_v40  ;;  %v489_v25 = vld [vmem:[#allocation6 + $0x530] sm:$0xff]  ;;  %v502_v32 = vld [vmem:[#allocation6 + $0x598] sm:$0xff] }
 0x1e9   :  { %1672 = vmatpush1.bf16.msra.mxu1 %v1671_v47  ;;  %v441_v47 = vld [vmem:[#allocation6 + $0x3b0] sm:$0xff]  ;;  %v1719_v28 = vpack.c.bf16 %v489_v25, %v485_v24  ;;  %v506_v33 = vld [vmem:[#allocation6 + $0x5b8] sm:$0xff]  ;;  %v534_v24 = vsub.s32 6, %v2315_v45 }
 0x1ea   :  { %1674 = vmatprep.subr.bf16.mxu1 %v1673_v51  ;;  %v1695_v51 = vpack.c.bf16 %v441_v47, %v437_v44  ;;  %v493_v30 = vld [vmem:[#allocation6 + $0x550] sm:$0xff]  ;;  %v510_v41 = vld [vmem:[#allocation6 + $0x5d8] sm:$0xff] }
 0x1eb   :  { %1768 = vmatpush1.bf16.msra.mxu0 %v1767_v56  ;;  %v458_v56 = vld [vmem:[#allocation6 + $0x438] sm:$0xff]  ;;  %v497_v31 = vld [vmem:[#allocation6 + $0x570] sm:$0xff] }
 0x1ec   :  { %1770 = vmatprep.subr.bf16.mxu0 %v1769_v57  ;;  %v1699_v57 = vpack.c.bf16 %v449_v54, %v445_v53  ;;  %v1701_v58 = vpack.c.bf16 %v458_v56, %v454_v55  ;;  %v501_v38 = vld [vmem:[#allocation6 + $0x590] sm:$0xff]  ;;  %v977_v44 = vld [vmem:[#allocation9 + $0x1b8] sm:$0xff] }
 0x1ed   :  { %1676 = vmatpush1.bf16.msra.mxu1 %v1675_v60  ;;  %v457_v60 = vld [vmem:[#allocation6 + $0x430] sm:$0xff] }
 0x1ee   :  { %1678 = vmatprep.subr.bf16.mxu1 %v1677_v63  ;;  %v1703_v63 = vpack.c.bf16 %v457_v60, %v453_v59  ;;  %v505_v39 = vld [vmem:[#allocation6 + $0x5b0] sm:$0xff]  ;;  %v858_v59 = vsub.s32 5, %v2315_v45  ;;  %v862_v60 = vsub.s32 7, %v2315_v45 }
 0x1ef   :  { %1772 = vmatpush1.bf16.msra.mxu0 %v1771_v8  ;;  %v474_v8 = vld [vmem:[#allocation6 + $0x4b8] sm:$0xff]  ;;  %v1727_v47 = vpack.c.bf16 %v505_v39, %v501_v38  ;;  %v509_v53 = vld [vmem:[#allocation6 + $0x5d0] sm:$0xff] }
 0x1f0   :  { %1774 = vmatprep.subr.bf16.mxu0 %v1773_v9  ;;  %v1707_v9 = vpack.c.bf16 %v465_v6, %v461_v5  ;;  %v1709_v10 = vpack.c.bf16 %v474_v8, %v470_v7  ;;  %v513_v54 = vld [vmem:[#allocation6 + $0x5f0] sm:$0xff] }
 0x1f1   :  { %1680 = vmatpush1.bf16.msra.mxu1 %v1679_v13  ;;  %v473_v13 = vld [vmem:[#allocation6 + $0x4b0] sm:$0xff] }
 0x1f2   :  { %1682 = vmatprep.subr.bf16.mxu1 %v1681_v17  ;;  %v1711_v17 = vpack.c.bf16 %v473_v13, %v469_v12  ;;  %v979_v56 = vld [vmem:[#allocation9 + $0x1c8] sm:$0xff]  ;;  %v984_v16 = vld [vmem:[#allocation9 + $0x1f0] sm:$0xff] }
 0x1f3   :  { %1776 = vmatpush1.bf16.msra.mxu0 %v1775_v22  ;;  %v490_v22 = vld [vmem:[#allocation6 + $0x538] sm:$0xff]  ;;  %v983_v8 = vld [vmem:[#allocation9 + $0x1e8] sm:$0xff] }
 0x1f4   :  { %1778 = vmatprep.subr.bf16.mxu0 %v1777_v23  ;;  %v1717_v23 = vpack.c.bf16 %v490_v22, %v486_v21  ;;  %v987_v21 = vld [vmem:[#allocation9 + $0x208] sm:$0xff]  ;;  %v989_v22 = vld [vmem:[#allocation9 + $0x218] sm:$0xff]  ;;  %v1208_v39 = vld [vmem:[#allocation10 + $0x10] sm:$0xff] }
 0x1f5   :  { %1684 = vmatpush1.bf16.msra.mxu1 %v1683_v26  ;;  %v494_v26 = vld [vmem:[#allocation6 + $0x558] sm:$0xff] }
 0x1f6   :  { %1686 = vmatprep.subr.bf16.mxu1 %v1685_v29  ;;  %v1721_v29 = vpack.c.bf16 %v498_v27, %v494_v26 }
 0x1f7   :  { %1780 = vmatpush1.bf16.msra.mxu0 %v1779_v34  ;;  %v1723_v34 = vpack.c.bf16 %v497_v31, %v493_v30  ;;  %v1222_v30 = vld [vmem:[#allocation10 + $0x80] sm:$0xff]  ;;  %v1223_v31 = vld [vmem:[#allocation10 + $0x88] sm:$0xff] }
 0x1f8   :  { %1782 = vmatprep.subr.bf16.mxu0 %v1781_v35  ;;  %v970_v35 = vld [vmem:[#allocation9 + $0x180] sm:$0xff] }
 0x1f9   :  { %1688 = vmatpush1.bf16.msra.mxu1 %v1687_v36  ;;  %v972_v36 = vld [vmem:[#allocation9 + $0x190] sm:$0xff] }
 0x1fa   :  { %1690 = vmatprep.subr.bf16.mxu1 %v1689_v37  ;;  %v1725_v37 = vpack.c.bf16 %v506_v33, %v502_v32  ;;  %v1783_v40 = vpack.c.bf16 %v972_v36, %v970_v35  ;;  %v1206_v32 = vld [vmem:[#allocation10] sm:$0xff]  ;;  %v1861_v33 = vpack.c.bf16 %v1223_v31, %v1222_v30  ;;  %v1224_v35 = vld [vmem:[#allocation10 + $0x90] sm:$0xff]  ;;  %v1225_v36 = vld [vmem:[#allocation10 + $0x98] sm:$0xff] }
 0x1fb   :  { %v1865_v38 = vpack.c.bf16 %v1225_v36, %v1224_v35 }
 0x1fc   :  { %1784 = vmatpush1.bf16.msra.mxu0 %v1783_v40  ;;  %v1209_v40 = vld [vmem:[#allocation10 + $0x18] sm:$0xff] }
 0x1fd   :  { %1692 = vmatpush1.bf16.msra.mxu1 %v1691_v42  ;;  %v514_v42 = vld [vmem:[#allocation6 + $0x5f8] sm:$0xff] }
 0x1fe   :  { %1694 = vmatprep.subr.bf16.mxu1 %v1693_v43  ;;  %v975_v43 = vld [vmem:[#allocation9 + $0x1a8] sm:$0xff] }
 0x1ff   :  { %v1785_v49 = vpack.c.bf16 %v977_v44, %v975_v43  ;;  %v1867_v43 = vpack.c.bf16 %v1209_v40, %v1208_v39 }
 0x201   :  { %1696 = vmatpush1.bf16.msra.mxu1 %v1695_v51  ;;  %v976_v51 = vld [vmem:[#allocation9 + $0x1b0] sm:$0xff]  ;;  %1786 = vmatprep.subr.bf16.mxu0 %v1785_v49  ;;  %v1211_v49 = vld [vmem:[#allocation10 + $0x28] sm:$0xff] }
 0x202   :  { %1698 = vmatprep.subr.bf16.mxu1 %v1697_v52  ;;  %v1729_v52 = vpack.c.bf16 %v514_v42, %v510_v41  ;;  %v1787_v55 = vpack.c.bf16 %v976_v51, %v974_v50  ;;  %v1226_v41 = vld [vmem:[#allocation10 + $0xa0] sm:$0xff]  ;;  %v1227_v42 = vld [vmem:[#allocation10 + $0xa8] sm:$0xff]  ;;  %v1228_v50 = vld [vmem:[#allocation10 + $0xb0] sm:$0xff] }
 0x203   :  { %v1869_v44 = vpack.c.bf16 %v1227_v42, %v1226_v41  ;;  %v1229_v51 = vld [vmem:[#allocation10 + $0xb8] sm:$0xff] }
 0x204   :  { %1788 = vmatpush1.bf16.msra.mxu0 %v1787_v55  ;;  %v1213_v55 = vld [vmem:[#allocation10 + $0x38] sm:$0xff] }
 0x205   :  { %1700 = vmatpush1.bf16.msra.mxu1 %v1699_v57  ;;  %v981_v57 = vld [vmem:[#allocation9 + $0x1d8] sm:$0xff] }
 0x206   :  { %1702 = vmatprep.subr.bf16.mxu1 %v1701_v58  ;;  %v1731_v58 = vpack.c.bf16 %v513_v54, %v509_v53  ;;  %v1789_v61 = vpack.c.bf16 %v981_v57, %v979_v56  ;;  %v1873_v53 = vpack.c.bf16 %v1229_v51, %v1228_v50  ;;  %v1212_v54 = vld [vmem:[#allocation10 + $0x30] sm:$0xff]  ;;  %v1230_v56 = vld [vmem:[#allocation10 + $0xc0] sm:$0xff]  ;;  %v1231_v57 = vld [vmem:[#allocation10 + $0xc8] sm:$0xff] }
 0x207   :  { %v993_v50 = vld [vmem:[#allocation9 + $0x238] sm:$0xff] }
 0x208   :  { %1430 = vmatmul.mubr.msk.f32.vlgmr.msra.gmra.mrb[4].mxu1 %vm2339_vm7, %v2139_v11  ;;  %1790 = vmatprep.subr.bf16.mxu0 %v1789_v61  ;;  %v854_v61 = vsub.s32 3, %v2315_v45 }
 0x209   :  { %1704 = vmatpush1.bf16.msra.mxu1 %v1703_v63  ;;  %837 = vmatprep.mubr.f32.mxu1 %v2133_v1  ;;  %v980_v63 = vld [vmem:[#allocation9 + $0x1d0] sm:$0xff] }
 0x20a   :  { %1706 = vmatprep.subr.bf16.mxu1 %v1705_v2  ;;  %v2357_v2 = vld [vmem:[%s2443_s4] sm:$0xff]  ;;  %v1791_v5 = vpack.c.bf16 %v980_v63, %v978_v62  ;;  %v1877_v62 = vpack.c.bf16 %v1231_v57, %v1230_v56  ;;  %v997_v57 = vld [vmem:[#allocation9 + $0x258] sm:$0xff] }
 0x20b   :  { %v859_v6 = vrot.slane %v2357_v2, %v858_v59  ;;  %v863_v7 = vrot.slane %v2357_v2, %v862_v60  ;;  %v535_v26 = vrot.slane %v2357_v2, %v534_v24  ;;  %v1875_v59 = vpack.c.bf16 %v1213_v55, %v1212_v54  ;;  %v1214_v63 = vld [vmem:[#allocation10 + $0x40] sm:$0xff]  ;;  %v992_v55 = vld [vmem:[#allocation9 + $0x230] sm:$0xff]  ;;  %v995_v56 = vld [vmem:[#allocation9 + $0x248] sm:$0xff] }
 0x20c   :  { %1792 = vmatpush1.bf16.msra.mxu0 %v1791_v5  ;;  %v527_v60 = vrot.slane %v2357_v2, %v2318_v46  ;;  %v1215_v5 = vld [vmem:[#allocation10 + $0x48] sm:$0xff]  ;;  %v990_v54 = vld [vmem:[#allocation9 + $0x220] sm:$0xff] }
 0x20d   :  { %1708 = vmatpush1.bf16.msra.mxu1 %v1707_v9  ;;  %v985_v9 = vld [vmem:[#allocation9 + $0x1f8] sm:$0xff]  ;;  %v879_v12 = vrot.slane %v859_v6, %v2324_v48  ;;  %v883_v13 = vrot.slane %v863_v7, %v2324_v48  ;;  %v1232_v6 = vld [vmem:[#allocation10 + $0xd0] sm:$0xff] }
 0x20e   :  { %1710 = vmatprep.subr.bf16.mxu1 %v1709_v10  ;;  %v982_v10 = vld [vmem:[#allocation9 + $0x1e0] sm:$0xff]  ;;  %v1793_v14 = vpack.c.bf16 %v985_v9, %v983_v8  ;;  %v1233_v7 = vld [vmem:[#allocation10 + $0xd8] sm:$0xff]  ;;  %v851_v9 = vrot.slane %v2357_v2, %v2324_v48 }
 0x210   :  { %1794 = vmatprep.subr.bf16.mxu0 %v1793_v14  ;;  %v1881_v14 = vpack.c.bf16 %v1233_v7, %v1232_v6 }
 0x211   :  { %1712 = vmatpush1.bf16.msra.mxu1 %v1711_v17  ;;  %v2363_v17 = vpop.permute.xlu1 %845 }
 0x212   :  { %1714 = vmatprep.subr.bf16.mxu1 %v1713_v18  ;;  %v1795_v18 = vpack.c.bf16 %v984_v16, %v982_v10  ;;  %v2366_v19 = vmul.f32 %v879_v12, %v2363_v17  ;;  %v2369_v20 = vmul.f32 %v883_v13, %v2363_v17  ;;  %v1879_v10 = vpack.c.bf16 %v1215_v5, %v1214_v63  ;;  %v1216_v16 = vld [vmem:[#allocation10 + $0x50] sm:$0xff]  ;;  %v999_v63 = vld [vmem:[#allocation9 + $0x268] sm:$0xff]  ;;  %v1001_v5 = vld [vmem:[#allocation9 + $0x278] sm:$0xff] }
 0x213   :  { %v547_v12 = vrot.slane %v527_v60, %v2327_v3  ;;  %v855_v13 = vrot.slane %v2357_v2, %v854_v61  ;;  %v994_v60 = vld [vmem:[#allocation9 + $0x240] sm:$0xff]  ;;  %v1809_v7 = vpack.c.bf16 %v1001_v5, %v999_v63  ;;  %v1032_v5 = vld [vmem:[#allocation9 + $0x370] sm:$0xff] }
 0x214   :  { %1796 = vmatpush1.bf16.msra.mxu0 %v1795_v18  ;;  %v1217_v18 = vld [vmem:[#allocation10 + $0x58] sm:$0xff]  ;;  %v1030_v63 = vld [vmem:[#allocation9 + $0x360] sm:$0xff] }
 0x215   :  { %1716 = vmatpush1.bf16.msra.mxu1 %v1715_v15  ;;  %v1797_v15 = vpack.c.bf16 %v989_v22, %v987_v21  ;;  %v1234_v21 = vld [vmem:[#allocation10 + $0xe0] sm:$0xff]  ;;  %v1235_v22 = vld [vmem:[#allocation10 + $0xe8] sm:$0xff]  ;;  %v1883_v24 = vpack.c.bf16 %v1217_v18, %v1216_v16  ;;  %v1004_v18 = vld [vmem:[#allocation9 + $0x290] sm:$0xff] }
 0x216   :  { %1718 = vmatprep.subr.bf16.mxu1 %v1717_v23  ;;  %v530_v23 = vsub.s32 4, %v2315_v45  ;;  %v1002_v16 = vld [vmem:[#allocation9 + $0x280] sm:$0xff]  ;;  %v1220_v45 = vld [vmem:[#allocation10 + $0x70] sm:$0xff] }
 0x217   :  { %1798 = vmatprep.subr.bf16.mxu0 %v1797_v15 }
 0x218   :  { %v531_v25 = vrot.slane %v2357_v2, %v530_v23  ;;  %v871_v23 = vrot.slane %v851_v9, %v2324_v48  ;;  %v1000_v9 = vld [vmem:[#allocation9 + $0x270] sm:$0xff] }
 0x219   :  { %1720 = vmatpush1.bf16.msra.mxu1 %v1719_v28  ;;  %v555_v28 = vrot.slane %v535_v26, %v2327_v3 }
 0x21a   :  { %1722 = vmatprep.subr.bf16.mxu1 %v1721_v29  ;;  %v551_v27 = vrot.slane %v531_v25, %v2327_v3  ;;  %v517_v29 = vpop.permute.xlu0 %516 }
 0x21b   :  { %v557_v26 = vmul.f32 %v547_v12, %v517_v29  ;;  %v1005_v12 = vld [vmem:[#allocation9 + $0x298] sm:$0xff] }
 0x21c   :  { %v2380_v4 = vmul.f32 %v551_v27, %v517_v29  ;;  %v875_v27 = vrot.slane %v855_v13, %v2324_v48 }
 0x21d   :  { %1724 = vmatpush1.bf16.msra.mxu1 %v1723_v34  ;;  %v1207_v34 = vld [vmem:[#allocation10 + $0x8] sm:$0xff] }
 0x21e   :  { %1726 = vmatprep.subr.bf16.mxu1 %v1725_v37  ;;  %v1863_v37 = vpack.c.bf16 %v1207_v34, %v1206_v32  ;;  %v884_v34 = vmul.f32 %v871_v23, %v2363_v17  ;;  %v885_v36 = vmul.f32 %v875_v27, %v2363_v17  ;;  %v1013_v27 = vld [vmem:[#allocation9 + $0x2d8] sm:$0xff] }
 0x221   :  { %1728 = vmatpush1.bf16.msra.mxu1 %v1727_v47  ;;  %v1210_v47 = vld [vmem:[#allocation10 + $0x20] sm:$0xff] }
 0x222   :  { %1730 = vmatprep.subr.bf16.mxu1 %v1729_v52  ;;  %v1871_v52 = vpack.c.bf16 %v1211_v49, %v1210_v47  ;;  %v991_v49 = vld [vmem:[#allocation9 + $0x228] sm:$0xff] }
 0x225   :  { %1732 = vmatpush1.bf16.msra.mxu1 %v1731_v58  ;;  %v523_v58 = vrot.slane %v2357_v2, %v2327_v3  ;;  %v2398_v2 = vld [vmem:[#allocation7] sm:$0xf] }
 0x226   :  { %1862 = vmatprep.subr.bf16.mxu1 %v1861_v33  ;;  %v901_v39 = vrot.slane %v2398_v2, %v2324_v48 }
 0x227   :  { %v543_v8 = vrot.slane %v523_v58, %v2327_v3  ;;  %v1803_v58 = vpack.c.bf16 %v992_v55, %v990_v54 }
 0x228   :  { %1431 = vmatmul.mubr.msk.f32.vlgmr.msra.gmra.mrb[4].mxu1 %vm2332_vm5, %v2139_v11  ;;  %v2382_v11 = vmul.f32 %v555_v28, %v517_v29  ;;  %v1885_v28 = vpack.c.bf16 %v1235_v22, %v1234_v21  ;;  %v1007_v21 = vld [vmem:[#allocation9 + $0x2a8] sm:$0xff]  ;;  %v1009_v22 = vld [vmem:[#allocation9 + $0x2b8] sm:$0xff] }
 0x229   :  { %1864 = vmatpush3.bf16.msra.mxu1 %v1863_v37  ;;  %v556_v15 = vmul.f32 %v543_v8, %v517_v29  ;;  %v897_v29 = vrot.slane %v2398_v2, %v2327_v3  ;;  %v998_v8 = vld [vmem:[#allocation9 + $0x260] sm:$0xff]  ;;  %v1817_v23 = vpack.c.bf16 %v1009_v22, %v1007_v21  ;;  %v1040_v22 = vld [vmem:[#allocation9 + $0x3b0] sm:$0xff] }
 0x22a   :  { %1866 = vmatprep.subr.bf16.mxu1 %v1865_v38  ;;  %v1811_v13 = vpack.c.bf16 %v1000_v9, %v998_v8  ;;  %v1843_v8 = vpack.c.bf16 %v1032_v5, %v1030_v63  ;;  %v1038_v21 = vld [vmem:[#allocation9 + $0x3a0] sm:$0xff]  ;;  %v1318_v63 = vld [vmem:[#allocation12 + $0x10] sm:$0xff]  ;;  %v1319_v5 = vld [vmem:[#allocation12 + $0x18] sm:$0xff] }
 0x22d   :  { %1868 = vmatpush3.bf16.msra.mxu1 %v1867_v43  ;;  %v986_v43 = vld [vmem:[#allocation9 + $0x200] sm:$0xff] }
 0x22e   :  { %1870 = vmatprep.subr.bf16.mxu1 %v1869_v44  ;;  %v988_v44 = vld [vmem:[#allocation9 + $0x210] sm:$0xff] }
 0x231   :  { %1872 = vmatpush3.bf16.msra.mxu1 %v1871_v52  ;;  %v1799_v52 = vpack.c.bf16 %v988_v44, %v986_v43  ;;  %v1020_v43 = vld [vmem:[#allocation9 + $0x310] sm:$0xff]  ;;  %v1023_v44 = vld [vmem:[#allocation9 + $0x328] sm:$0xff] }
 0x232   :  { %1874 = vmatprep.subr.bf16.mxu1 %v1873_v53  ;;  %v1801_v53 = vpack.c.bf16 %v993_v50, %v991_v49 }
 0x235   :  { %1876 = vmatpush3.bf16.msra.mxu1 %v1875_v59  ;;  %v1805_v59 = vpack.c.bf16 %v997_v57, %v995_v56  ;;  %v1026_v56 = vld [vmem:[#allocation9 + $0x340] sm:$0xff]  ;;  %v1028_v57 = vld [vmem:[#allocation9 + $0x350] sm:$0xff] }
 0x236   :  { %1878 = vmatprep.subr.bf16.mxu1 %v1877_v62  ;;  %v996_v62 = vld [vmem:[#allocation9 + $0x250] sm:$0xff] }
 0x237   :  { %v1807_v6 = vpack.c.bf16 %v996_v62, %v994_v60  ;;  %v1839_v60 = vpack.c.bf16 %v1028_v57, %v1026_v56  ;;  %v1316_v56 = vld [vmem:[#allocation12] sm:$0xff]  ;;  %v1317_v57 = vld [vmem:[#allocation12 + $0x8] sm:$0xff] }
 0x239   :  { %1880 = vmatpush3.bf16.msra.mxu1 %v1879_v10  ;;  %v1003_v10 = vld [vmem:[#allocation9 + $0x288] sm:$0xff] }
 0x23a   :  { %1882 = vmatprep.subr.bf16.mxu1 %v1881_v14  ;;  %v1813_v14 = vpack.c.bf16 %v1005_v12, %v1003_v10  ;;  %v1034_v10 = vld [vmem:[#allocation9 + $0x380] sm:$0xff]  ;;  %v1036_v12 = vld [vmem:[#allocation9 + $0x390] sm:$0xff] }
 0x23d   :  { %1884 = vmatpush3.bf16.msra.mxu1 %v1883_v24  ;;  %v1006_v24 = vld [vmem:[#allocation9 + $0x2a0] sm:$0xff] }
 0x23e   :  { %1886 = vmatprep.subr.bf16.mxu1 %v1885_v28 }
 0x29b   :  { %v697_v25 = vpop.f32.mrb[2].mxu1 }
 0x29c   :  { %v699_v30 = vpop.f32.mrb[3].mxu1 }
 0x29d   :  { %v626_v31 = vpop.f32.mrb[2].mxu0 }
 0x29e   :  { %v627_v32 = vadd.f32 %v626_v31, %v556_v15  ;;  %v628_v33 = vpop.f32.mrb[3].mxu0  ;;  %v1815_v15 = vpack.c.bf16 %v1004_v18, %v1002_v16  ;;  %v1010_v31 = vld [vmem:[#allocation9 + $0x2c0] sm:$0xff]  ;;  %v1847_v16 = vpack.c.bf16 %v1036_v12, %v1034_v10 }
 0x29f   :  { %v629_v35 = vadd.f32 %v628_v33, %v557_v26  ;;  %v1011_v26 = vld [vmem:[#allocation9 + $0x2c8] sm:$0xff]  ;;  %v1324_v12 = vld [vmem:[#allocation12 + $0x40] sm:$0xff] }
 0x2a0   :  { %v698_v37 = vadd.f32 %v697_v25, %v627_v32  ;;  %v1008_v25 = vld [vmem:[#allocation9 + $0x2b0] sm:$0xff]  ;;  %v1015_v33 = vld [vmem:[#allocation9 + $0x2e8] sm:$0xff] }
 0x2a1   :  { %v700_v38 = vadd.f32 %v699_v30, %v629_v35  ;;  %v1819_v28 = vpack.c.bf16 %v1008_v25, %v1006_v24  ;;  %v1821_v30 = vpack.c.bf16 %v1013_v27, %v1011_v26  ;;  %v1012_v32 = vld [vmem:[#allocation9 + $0x2d0] sm:$0xff]  ;;  %v1851_v24 = vpack.c.bf16 %v1040_v22, %v1038_v21  ;;  %v1042_v26 = vld [vmem:[#allocation9 + $0x3c0] sm:$0xff]  ;;  %v1329_v22 = vld [vmem:[#allocation12 + $0x68] sm:$0xff] }
 0x2a2   :  { %v888_v40 = vadd.f32 %v884_v34, %v698_v37  ;;  %v1017_v34 = vld [vmem:[#allocation9 + $0x2f8] sm:$0xff]  ;;  %v1823_v35 = vpack.c.bf16 %v1012_v32, %v1010_v31  ;;  %v1014_v37 = vld [vmem:[#allocation9 + $0x2e0] sm:$0xff]  ;;  %v1044_v27 = vld [vmem:[#allocation9 + $0x3d0] sm:$0xff] }
 0x2a3   :  { %v889_v41 = vadd.f32 %v885_v36, %v700_v38  ;;  %v1825_v36 = vpack.c.bf16 %v1017_v34, %v1015_v33  ;;  %v1019_v38 = vld [vmem:[#allocation9 + $0x308] sm:$0xff]  ;;  %v1855_v31 = vpack.c.bf16 %v1044_v27, %v1042_v26  ;;  %v1046_v33 = vld [vmem:[#allocation9 + $0x3e0] sm:$0xff]  ;;  %v1048_v34 = vld [vmem:[#allocation9 + $0x3f0] sm:$0xff] }
 0x2a4   :  { %v914_v42 = vadd.f32 %v897_v29, %v888_v40  ;;  %v1016_v29 = vld [vmem:[#allocation9 + $0x2f0] sm:$0xff]  ;;  %v1328_v21 = vld [vmem:[#allocation12 + $0x60] sm:$0xff] }
 0x2a5   :  { %v915_v47 = vadd.f32 %v901_v39, %v889_v41  ;;  %v1021_v39 = vld [vmem:[#allocation9 + $0x318] sm:$0xff]  ;;  %v1827_v40 = vpack.c.bf16 %v1016_v29, %v1014_v37  ;;  %v905_v29 = vrot.slane %v2398_v2, %v2318_v46  ;;  %v1432_v27 = vld [vmem:[%s2448_s9] ss:$0 sm:$0xff] }
 0x2a6   :  { %v918_v17 = vmax.f32 %v914_v42, 0.0  ;;  %v1829_v41 = vpack.c.bf16 %v1021_v39, %v1019_v38  ;;  %v1018_v42 = vld [vmem:[#allocation9 + $0x300] sm:$0xff] }
 0x2a7   :  { %v919_v51 = vmax.f32 %v915_v47, 0.0  ;;  %v1025_v47 = vld [vmem:[#allocation9 + $0x338] sm:$0xff]  ;;  %v1831_v49 = vpack.c.bf16 %v1020_v43, %v1018_v42 }
 0x2a8   :  { %v1833_v50 = vpack.c.bf16 %v1025_v47, %v1023_v44 }
 0x2a9   :  { %1126 = vmatprep.mubr.f32.mxu0 %v919_v51  ;;  %v1022_v51 = vld [vmem:[#allocation9 + $0x320] sm:$0xff] }
 0x2aa   :  { %1127 = vmatmul.mubr.f32.vlgmr.msra.gmra.mrb[4].mxu0 %v918_v17  ;;  %v1027_v17 = vld [vmem:[#allocation9 + $0x348] sm:$0xff] }
 0x2ab   :  { %1800 = vmatpush1.bf16.msra.mxu0 %v1799_v52  ;;  %v1024_v52 = vld [vmem:[#allocation9 + $0x330] sm:$0xff] }
 0x2ac   :  { %1802 = vmatprep.subr.bf16.mxu0 %v1801_v53  ;;  %v1029_v53 = vld [vmem:[#allocation9 + $0x358] sm:$0xff]  ;;  %v1835_v54 = vpack.c.bf16 %v1024_v52, %v1022_v51  ;;  %v1236_v51 = vld [vmem:[#allocation10 + $0xf0] sm:$0xff] }
 0x2ad   :  { %v1837_v55 = vpack.c.bf16 %v1029_v53, %v1027_v17  ;;  %v1221_v17 = vld [vmem:[#allocation10 + $0x78] sm:$0xff] }
 0x2af   :  { %1804 = vmatpush1.bf16.msra.mxu0 %v1803_v58  ;;  %v1031_v58 = vld [vmem:[#allocation9 + $0x368] sm:$0xff] }
 0x2b0   :  { %1806 = vmatprep.subr.bf16.mxu0 %v1805_v59  ;;  %v1033_v59 = vld [vmem:[#allocation9 + $0x378] sm:$0xff] }
 0x2b1   :  { %v1841_v62 = vpack.c.bf16 %v1033_v59, %v1031_v58 }
 0x2b3   :  { %1808 = vmatpush1.bf16.msra.mxu0 %v1807_v6  ;;  %v1035_v6 = vld [vmem:[#allocation9 + $0x388] sm:$0xff] }
 0x2b4   :  { %1810 = vmatprep.subr.bf16.mxu0 %v1809_v7  ;;  %v1037_v7 = vld [vmem:[#allocation9 + $0x398] sm:$0xff] }
 0x2b5   :  { %v1845_v9 = vpack.c.bf16 %v1037_v7, %v1035_v6  ;;  %v1897_v6 = vpack.c.bf16 %v1319_v5, %v1318_v63 }
 0x2b7   :  { %1812 = vmatpush1.bf16.msra.mxu0 %v1811_v13  ;;  %v1039_v13 = vld [vmem:[#allocation9 + $0x3a8] sm:$0xff] }
 0x2b8   :  { %1814 = vmatprep.subr.bf16.mxu0 %v1813_v14  ;;  %v1041_v14 = vld [vmem:[#allocation9 + $0x3b8] sm:$0xff] }
 0x2b9   :  { %v1849_v18 = vpack.c.bf16 %v1041_v14, %v1039_v13  ;;  %v1325_v13 = vld [vmem:[#allocation12 + $0x48] sm:$0xff] }
 0x2ba   :  { %v1906_v14 = vpack.c.bf16 %v1325_v13, %v1324_v12 }
 0x2bb   :  { %1816 = vmatpush1.bf16.msra.mxu0 %v1815_v15  ;;  %v1043_v15 = vld [vmem:[#allocation9 + $0x3c8] sm:$0xff] }
 0x2bc   :  { %1818 = vmatprep.subr.bf16.mxu0 %v1817_v23  ;;  %v1045_v23 = vld [vmem:[#allocation9 + $0x3d8] sm:$0xff] }
 0x2bd   :  { %v1853_v25 = vpack.c.bf16 %v1045_v23, %v1043_v15  ;;  %v1912_v15 = vpack.c.bf16 %v1329_v22, %v1328_v21  ;;  %v1330_v23 = vld [vmem:[#allocation12 + $0x70] sm:$0xff] }
 0x2bf   :  { %1820 = vmatpush1.bf16.msra.mxu0 %v1819_v28  ;;  %v1047_v28 = vld [vmem:[#allocation9 + $0x3e8] sm:$0xff] }
 0x2c0   :  { %1822 = vmatprep.subr.bf16.mxu0 %v1821_v30  ;;  %v1049_v30 = vld [vmem:[#allocation9 + $0x3f8] sm:$0xff] }
 0x2c1   :  { %v1857_v32 = vpack.c.bf16 %v1049_v30, %v1047_v28 }
 0x2c3   :  { %1824 = vmatpush1.bf16.msra.mxu0 %v1823_v35  ;;  %v1859_v35 = vpack.c.bf16 %v1048_v34, %v1046_v33  ;;  %v1433_v33 = vld [vmem:[%s2450_s11] ss:$0 sm:$0xff] }
 0x2c4   :  { %1826 = vmatprep.subr.bf16.mxu0 %v1825_v36 }
 0x2c7   :  { %1828 = vmatpush1.bf16.msra.mxu0 %v1827_v40  ;;  %v909_v40 = vrot.slane %v2398_v2, %v854_v61  ;;  %v1891_v61 = vpack.c.bf16 %v1221_v17, %v1220_v45 }
 0x2c8   :  { %1830 = vmatprep.subr.bf16.mxu0 %v1829_v41 }
 0x2cb   :  { %1832 = vmatpush1.bf16.msra.mxu0 %v1831_v49 }
 0x2cc   :  { %1834 = vmatprep.subr.bf16.mxu0 %v1833_v50  ;;  %v1219_v50 = vld [vmem:[#allocation10 + $0x68] sm:$0xff] }
 0x2cf   :  { %1836 = vmatpush1.bf16.msra.mxu0 %v1835_v54 }
 0x2d0   :  { %1838 = vmatprep.subr.bf16.mxu0 %v1837_v55 }
 0x2d3   :  { %1840 = vmatpush1.bf16.msra.mxu0 %v1839_v60  ;;  %v1894_v60 = vpack.c.bf16 %v1317_v57, %v1316_v56 }
 0x2d4   :  { %1842 = vmatprep.subr.bf16.mxu0 %v1841_v62 }
 0x2d7   :  { %1844 = vmatpush1.bf16.msra.mxu0 %v1843_v8  ;;  %v1322_v8 = vld [vmem:[#allocation12 + $0x30] sm:$0xff] }
 0x2d8   :  { %1846 = vmatprep.subr.bf16.mxu0 %v1845_v9  ;;  %v1323_v9 = vld [vmem:[#allocation12 + $0x38] sm:$0xff] }
 0x2d9   :  { %v1903_v10 = vpack.c.bf16 %v1323_v9, %v1322_v8 }
 0x2db   :  { %1848 = vmatpush1.bf16.msra.mxu0 %v1847_v16  ;;  %v1327_v16 = vld [vmem:[#allocation12 + $0x58] sm:$0xff] }
 0x2dc   :  { %1850 = vmatprep.subr.bf16.mxu0 %v1849_v18 }
 0x2df   :  { %1852 = vmatpush1.bf16.msra.mxu0 %v1851_v24  ;;  %v1331_v24 = vld [vmem:[#allocation12 + $0x78] sm:$0xff] }
 0x2e0   :  { %1854 = vmatprep.subr.bf16.mxu0 %v1853_v25  ;;  %v1915_v25 = vpack.c.bf16 %v1331_v24, %v1330_v23 }
 0x2e3   :  { %1856 = vmatpush1.bf16.msra.mxu0 %v1855_v31 }
 0x2e4   :  { %1858 = vmatprep.subr.bf16.mxu0 %v1857_v32 }
 0x2e7   :  { %1860 = vmatpush1.bf16.msra.mxu0 %v1859_v35 }
 0x2fb   :  { %v839_v36 = vpop.f32.mrb[4].mxu1 }
 0x2fc   :  { %v1921_v37 = vadd.f32 %v839_v36, %v2380_v4  ;;  %v841_v38 = vpop.f32.mrb[5].mxu1  ;;  %v1218_v4 = vld [vmem:[#allocation10 + $0x60] sm:$0xff] }
 0x2fd   :  { %v1922_v39 = vadd.f32 %v841_v38, %v2382_v11  ;;  %v1887_v46 = vpack.c.bf16 %v1219_v50, %v1218_v4  ;;  %v1237_v11 = vld [vmem:[#allocation10 + $0xf8] sm:$0xff] }
 0x2fe   :  { %v890_v41 = vadd.f32 %v1921_v37, %v2366_v19  ;;  %v1889_v52 = vpack.c.bf16 %v1237_v11, %v1236_v51  ;;  %v1050_v19 = vld [vmem:[%s2446_s7] sm:$0x3] }
 0x2ff   :  { %v891_v42 = vadd.f32 %v1922_v39, %v2369_v20  ;;  %1888 = vmatpush3.bf16.msra.mxu1 %v1887_v46  ;;  %v1055_v20 = vrot.slane %v1050_v19, %v2327_v3  ;;  %v1059_v2 = vrot.slane %v1050_v19, %v2324_v48  ;;  %v1320_v48 = vld [vmem:[#allocation12 + $0x20] sm:$0xff]  ;;  %v1321_v3 = vld [vmem:[#allocation12 + $0x28] sm:$0xff] }
 0x300   :  { %v916_v43 = vadd.f32 %v905_v29, %v890_v41  ;;  %1890 = vmatprep.subr.bf16.mxu1 %v1889_v52  ;;  %v1900_v7 = vpack.c.bf16 %v1321_v3, %v1320_v48 }
 0x301   :  { %v917_v44 = vadd.f32 %v909_v40, %v891_v42 }
 0x302   :  { %v920_v49 = vmax.f32 %v916_v43, 0.0 }
 0x303   :  { %v921_v47 = vmax.f32 %v917_v44, 0.0  ;;  %1892 = vmatpush3.bf16.msra.mxu1 %v1891_v61 }
 0x304   :  { %1893 = vmatprep.subr.bf16.mxu1 %v2132_v0 }
 0x305   :  { %1197 = vmatprep.mubr.f32.mxu0 %v921_v47 }
 0x306   :  { %1198 = vmatmul.mubr.f32.vlgmr.msra.gmra.mrb[4].mxu0 %v920_v49 }
 0x3d9   :  { %v1199_v53 = vpop.f32.mrb[4].mxu0 }
 0x3da   :  { %v1923_v54 = vadd.f32 %v1199_v53, %v1055_v20  ;;  %v1201_v55 = vpop.f32.mrb[5].mxu0 }
 0x3db   :  { %v1924_v58 = vadd.f32 %v1201_v55, %v1059_v2 }
 0x3dc   :  { %v1204_v62 = vmax.f32 %v1923_v54, 0.0 }
 0x3dd   :  { %v1205_v59 = vmax.f32 %v1924_v58, 0.0 }
 0x3df   :  { %1309 = vmatprep.mubr.f32.mxu1 %v1205_v59 }
 0x3e0   :  { %1310 = vmatmul.mubr.f32.vlgmr.msra.gmra.mrb[6].mxu1 %v1204_v62 }
 0x3e1   :  { %1895 = vmatpush3.bf16.msra.mxu1 %v1894_v60  ;;  %1528 = vmatprep.mubr.msk.f32.mxu1 %vm2134_vm0, %v2133_v1  ;;  %v1326_v1 = vld [vmem:[#allocation12 + $0x50] sm:$0xff] }
 0x3e2   :  { %1896 = vmatprep.subr.bf16.mxu1 %v2132_v0  ;;  %v1909_v18 = vpack.c.bf16 %v1327_v16, %v1326_v1 }
 0x3e5   :  { %1898 = vmatpush3.bf16.msra.mxu1 %v1897_v6 }
 0x3e6   :  { %1899 = vmatprep.subr.bf16.mxu1 %v2132_v0 }
 0x3e9   :  { %1901 = vmatpush3.bf16.msra.mxu1 %v1900_v7 }
 0x3ea   :  { %1902 = vmatprep.subr.bf16.mxu1 %v2132_v0 }
 0x3ed   :  { %1904 = vmatpush3.bf16.msra.mxu1 %v1903_v10 }
 0x3ee   :  { %1905 = vmatprep.subr.bf16.mxu1 %v2132_v0 }
 0x3f1   :  { %1907 = vmatpush3.bf16.msra.mxu1 %v1906_v14 }
 0x3f2   :  { %1908 = vmatprep.subr.bf16.mxu1 %v2132_v0 }
 0x3f5   :  { %1910 = vmatpush3.bf16.msra.mxu1 %v1909_v18 }
 0x3f6   :  { %1911 = vmatprep.subr.bf16.mxu1 %v2132_v0 }
 0x3f9   :  { %1913 = vmatpush3.bf16.msra.mxu1 %v1912_v15 }
 0x3fa   :  { %1914 = vmatprep.subr.bf16.mxu1 %v2132_v0 }
 0x3fd   :  { %1916 = vmatpush3.bf16.msra.mxu1 %v1915_v25 }
 0x4b3   :  { %v1469_v26 = vpop.f32.mrb[6].mxu1 }
 0x4b4   :  { %v1470_v28 = vpop.f32.mrb[7].mxu1 }
 0x4b5   :  { %v1471_v30 = vadd.f32 %v1470_v28, %v1469_v26 }
 0x4b7   :  { %v1312_v31 = vadd.f32 %v1471_v30, %v1432_v27 }
 0x4b9   :  { %v1315_v32 = vmax.f32 %v1312_v31, 0.0 }
 0x4bb   :  { %1529 = vmatmul.mubr.f32.vlgmr.msra.gmra.mrb[8].mxu1 %v1315_v32 }
 0x58e   :  { %v1405_v34 = vpop.f32.mrb[8].mxu1 }
 0x58f   :  { %v1406_v0 = vadd.f32 %v1433_v33, %v1405_v34  ;;  %v1530_v35 = vpop.f32.mrb[9].mxu1 }
 0x591   :  { %1409 = vst [vmem:[%s2451_s12] sm:$0xff] %v1406_v0 }
 0x592   :  { %1414 = vsyncpa [#allocation3], 1 }
 0x593   :  { %1415 = vsyncpa [#allocation5], 1 }
 0x594   :  { %1416 = vsyncpa [#allocation8], 1 }
 0x595   :  { %1417 = vsyncpa [#allocation11], 1 }

</bundles_post_ra>
